<compile_context>
chip_gen: v6e
topology: v6e:2x2x1
jax: 0.10.0
libtpu: 0.0.40
codegen_flags: <defaults>
</compile_context>

<pallas_src>
import functools

import jax
import jax.numpy as jnp
from jax.experimental import pallas as pl
from jax.experimental.pallas import tpu as pltpu


def _round_up(x, m):
    return ((x + m - 1) // m) * m


def _vmem_limit_bytes():
    """Generation-aware VMEM limit (leave headroom for compiler scratch)."""
    try:
        cap = pltpu.get_tpu_info().vmem_capacity_bytes
    except Exception:
        cap = 128 * 1024 * 1024
    return int(cap * 0.85)


def _tile_vmem_bytes(tm, tv, D, V_pad, cdtype_size):
    """Conservative VMEM estimate: double-buffered x/w/bias tiles + resident
    (possibly double-buffered) output block + tiny accumulator scratch."""
    return (
        2 * tm * D * cdtype_size      # activation row tile (double-buffered)
        + 2 * D * tv * cdtype_size    # streamed weight tile (double-buffered)
        + 2 * 8 * tv * 4              # bias tile (sublane-padded, double-buffered)
        + 2 * tm * V_pad * 4          # resident f32 output block (conservative 2x)
        + 2 * tm * 4                  # m / s accumulators
    )


def prepare_generator_params(w, b, *, tv=2048, compute_dtype=jnp.bfloat16):
    """Cast / pad the projection once at setup time (hoisted out of forward).

    w: [D, V] f32, b: [V] f32  ->  (w_pad bf16 [D, V_pad], b_pad f32 [1, V_pad], tv_eff)
    """
    D, V = w.shape
    tv_eff = min(tv, _round_up(V, 128))
    V_pad = _round_up(V, tv_eff)

    w_pad = w.astype(compute_dtype)
    # Bias stays f32: -1e30 padding would be -inf in bf16 (NaN risk in max/exp).
    b_pad = b.astype(jnp.float32).reshape(1, V)
    if V_pad != V:
        w_pad = jnp.pad(w_pad, ((0, 0), (0, V_pad - V)))
        # Padded vocab columns: huge negative bias -> exp underflows to 0, so
        # they do not perturb the log-sum-exp of the real columns.
        b_pad = jnp.pad(b_pad, ((0, 0), (0, V_pad - V)), constant_values=-1e30)
    return w_pad, b_pad, tv_eff


def _generator_kernel(nv, tv, x_ref, w_ref, b_ref, o_ref, m_ref, s_ref):
    """One (row-tile i, vocab-tile j) grid step.

    x_ref: (tm, D)     bf16 activation row tile (resident across j)
    w_ref: (D, tv)     bf16 weight tile (streamed over the vocab axis)
    b_ref: (1, tv)     f32 bias tile
    o_ref: (tm, V_pad) output row block (resident across j; raw logits are
                       written per-tile, normalized in place at j == nv-1)
    m_ref, s_ref: (tm, 1) f32 online max / sum-of-exp accumulators
    """
    j = pl.program_id(1)

    @pl.when(j == 0)
    def _init():
        m_ref[...] = jnp.full(m_ref.shape, -jnp.inf, dtype=m_ref.dtype)
        s_ref[...] = jnp.zeros(s_ref.shape, dtype=s_ref.dtype)

    # MXU matmul (bf16 operands, f32 accumulation); bias already f32.
    logits = (
        jnp.dot(x_ref[...], w_ref[...], preferred_element_type=jnp.float32)
        + b_ref[...]
    )

    # Flash-style running max / sum-of-exp over the vocab axis (all f32).
    m_prev = m_ref[...]
    m_new = jnp.maximum(m_prev, jnp.max(logits, axis=-1, keepdims=True))
    alpha = jnp.exp(m_prev - m_new)
    s_ref[...] = s_ref[...] * alpha + jnp.sum(
        jnp.exp(logits - m_new), axis=-1, keepdims=True
    )
    m_ref[...] = m_new

    # Write raw logits straight into the resident, lane-dense output block.
    col = pl.multiple_of(j * tv, 128)
    o_ref[:, pl.ds(col, tv)] = logits.astype(o_ref.dtype)

    @pl.when(j == nv - 1)
    def _finalize():
        lse = m_ref[...] + jnp.log(s_ref[...])  # (tm, 1)
        # Single vectorized in-place normalization of the whole (tm, V_pad) block.
        o_ref[...] = (o_ref[...] - lse).astype(o_ref.dtype)


def generator_forward_prepared(
    x, w_pad, b_pad, vocab_size, tv_eff, *, tm=256, compute_dtype=jnp.bfloat16,
    out_dtype=jnp.float32,
):
    """x: [B, S, D]; w_pad: [D, V_pad] bf16; b_pad: [1, V_pad] f32 -> [B, S, V]."""
    B, S, D = x.shape
    V_pad = w_pad.shape[1]
    V = vocab_size
    M = B * S
    csize = jnp.dtype(compute_dtype).itemsize

    # Row tile: multiple of 16 for bf16 sublane packing; clamp for tiny M.
    tm_eff = min(tm, _round_up(M, 16))
    tm_eff = max(16, (tm_eff // 16) * 16)

    # Shrink tiles if the resident output block + streamed tiles exceed VMEM.
    vmem_limit = _vmem_limit_bytes()
    budget = int(vmem_limit * 0.9)
    tv_run = tv_eff
    while _tile_vmem_bytes(tm_eff, tv_run, D, V_pad, csize) > budget and tm_eff > 16:
        tm_eff = max(16, tm_eff // 2)
    # TODO(synk): if it still does not fit (huge vocab), fall back to per-tile
    # outputs + separate lse normalization pass instead of shrinking further.

    M_pad = _round_up(M, tm_eff)
    nm = M_pad // tm_eff
    nv = V_pad // tv_run

    x2 = x.reshape(M, D).astype(compute_dtype)
    if M_pad != M:
        x2 = jnp.pad(x2, ((0, M_pad - M), (0, 0)))

    kernel = functools.partial(_generator_kernel, nv, tv_run)

    cost = pl.CostEstimate(
        flops=2 * M_pad * D * V_pad,
        transcendentals=M_pad * V_pad,
        bytes_accessed=(
            M_pad * D * csize                 # activations (read once per row tile)
            + nm * D * V_pad * csize          # weight re-streamed per row tile
            + nm * V_pad * 4                  # bias
            + M_pad * V_pad * jnp.dtype(out_dtype).itemsize  # output log-probs
        ),
    )

    out = pl.pallas_call(
        kernel,
        out_shape=jax.ShapeDtypeStruct((M_pad, V_pad), out_dtype),
        grid=(nm, nv),
        in_specs=[
            pl.BlockSpec((tm_eff, D), lambda i, j: (i, 0)),    # activation row tile
            pl.BlockSpec((D, tv_run), lambda i, j: (0, j)),    # streamed weight tile
            pl.BlockSpec((1, tv_run), lambda i, j: (0, j)),    # bias tile (f32)
        ],
        out_specs=pl.BlockSpec((tm_eff, V_pad), lambda i, j: (i, 0)),  # lane-dense block
        scratch_shapes=[
            pltpu.VMEM((tm_eff, 1), jnp.float32),  # running max
            pltpu.VMEM((tm_eff, 1), jnp.float32),  # running sum-of-exp
        ],
        compiler_params=pltpu.CompilerParams(
            dimension_semantics=("parallel", "arbitrary"),
            vmem_limit_bytes=vmem_limit,
        ),
        cost_estimate=cost,
    )(x2, w_pad, b_pad)

    return out[:M, :V].reshape(B, S, V)


def generator_forward(x, w, b, *, tm=256, tv=2048, compute_dtype=jnp.bfloat16):
    """Convenience wrapper: x [B,S,D], w [D,V], b [V] -> log-probs [B,S,V] (f32).

    For production, call prepare_generator_params() once at setup and use
    generator_forward_prepared() per step to avoid re-casting/padding weights.
    """
    V = w.shape[1]
    w_pad, b_pad, tv_eff = prepare_generator_params(
        w, b, tv=tv, compute_dtype=compute_dtype
    )
    return generator_forward_prepared(
        x, w_pad, b_pad, V, tv_eff, tm=tm, compute_dtype=compute_dtype
    )


if __name__ == "__main__":
    # Small shapes consistent with the module: d_model=512, vocab_size=1000,
    # source/target tokens of shape [2, 4]  ->  x is [2, 4, 512].
    batch, seq, d_model, vocab = 2, 4, 512, 1000

    key = jax.random.PRNGKey(0)
    kx, kw, kb = jax.random.split(key, 3)

    x = jax.random.normal(kx, (batch, seq, d_model), dtype=jnp.float32)
    # PyTorch-style nn.Linear init scale 1/sqrt(d_model); w stored [d_model, vocab].
    bound = 1.0 / (d_model ** 0.5)
    w = jax.random.uniform(kw, (d_model, vocab), minval=-bound, maxval=bound, dtype=jnp.float32)
    b = jax.random.uniform(kb, (vocab,), minval=-bound, maxval=bound, dtype=jnp.float32)

    # Hoist weight cast/pad out of the per-call path (done once).
    w_pad, b_pad, tv_eff = prepare_generator_params(w, b)
    out = generator_forward_prepared(x, w_pad, b_pad, vocab, tv_eff)
    out = jax.block_until_ready(out)
    assert out.shape == (batch, seq, vocab)

    # Reference 1: same bf16-operand / f32-accumulation pipeline as the kernel.
    logits_bf16 = (
        jnp.einsum(
            "bsd,dv->bsv",
            x.astype(jnp.bfloat16),
            w.astype(jnp.bfloat16),
            preferred_element_type=jnp.float32,
        )
        + b
    )
    ref_bf16 = jax.nn.log_softmax(logits_bf16, axis=-1)
    assert jnp.allclose(out, ref_bf16, atol=1e-3, rtol=1e-3), "mismatch vs bf16-matmul reference"

    # Reference 2: full-f32 reference (module semantics); loose tolerance for the
    # bf16 operand cast used on the MXU.
    ref_f32 = jax.nn.log_softmax(jnp.einsum("bsd,dv->bsv", x, w) + b, axis=-1)
    assert jnp.allclose(out, ref_f32, atol=5e-2, rtol=5e-2), "mismatch vs f32 reference"

    print("KERNEL_OK")
</pallas_src>

<mosaic_0001>
module attributes {stable_mosaic.version = 11 : i64} {
  func.func @_generator_kernel(%arg0: i32, %arg1: i32, %arg2: memref<16x512xbf16, #tpu.memory_space<vmem>>, %arg3: memref<512x1024xbf16, #tpu.memory_space<vmem>>, %arg4: memref<1x1024xf32, #tpu.memory_space<vmem>>, %arg5: memref<16x1024xf32, #tpu.memory_space<vmem>>, %arg6: memref<16x1xf32, #tpu.memory_space<vmem>>, %arg7: memref<16x1xf32, #tpu.memory_space<vmem>>) attributes {dimension_semantics = [#tpu.dimension_semantics<parallel>, #tpu.dimension_semantics<arbitrary>], iteration_bounds = array<i64: 1, 1>, scalar_prefetch = 0 : i64, scratch_operands = 2 : i64, tpu.core_type = #tpu.core_type<tc>, window_params = [{transform_indices = @transform_0, window_bounds = array<i64: 16, 512>}, {transform_indices = @transform_1, window_bounds = array<i64: 512, 1024>}, {transform_indices = @transform_2, window_bounds = array<i64: 1, 1024>}, {transform_indices = @transform_3, window_bounds = array<i64: 16, 1024>}]} {
    %c0_i32 = arith.constant 0 : i32
    %0 = arith.cmpi eq, %arg1, %c0_i32 : i32
    %1 = arith.extui %0 : i1 to i32
    %c0_i32_0 = arith.constant 0 : i32
    %2 = arith.cmpi ne, %1, %c0_i32_0 : i32
    scf.if %2 {
      %cst_19 = arith.constant 0xFF800000 : f32
      %32 = vector.broadcast %cst_19 : f32 to vector<16x1xf32>
      %c0_20 = arith.constant 0 : index
      %c0_21 = arith.constant 0 : index
      %33 = vector.load %arg6[%c0_20, %c0_21] : memref<16x1xf32, #tpu.memory_space<vmem>>, vector<16x1xf32>
      tpu.vector_store %arg6[%c0_20, %c0_21], %32 {strides = array<i32>} : memref<16x1xf32, #tpu.memory_space<vmem>>, vector<16x1xf32>,
      %cst_22 = arith.constant 0.000000e+00 : f32
      %34 = vector.broadcast %cst_22 : f32 to vector<16x1xf32>
      %c0_23 = arith.constant 0 : index
      %c0_24 = arith.constant 0 : index
      %35 = vector.load %arg7[%c0_23, %c0_24] : memref<16x1xf32, #tpu.memory_space<vmem>>, vector<16x1xf32>
      tpu.vector_store %arg7[%c0_23, %c0_24], %34 {strides = array<i32>} : memref<16x1xf32, #tpu.memory_space<vmem>>, vector<16x1xf32>,
    } else {
    }
    %c0 = arith.constant 0 : index
    %c0_1 = arith.constant 0 : index
    %3 = vector.load %arg2[%c0, %c0_1] : memref<16x512xbf16, #tpu.memory_space<vmem>>, vector<16x512xbf16>
    %c0_2 = arith.constant 0 : index
    %c0_3 = arith.constant 0 : index
    %4 = vector.load %arg3[%c0_2, %c0_3] : memref<512x1024xbf16, #tpu.memory_space<vmem>>, vector<512x1024xbf16>
    %cst = arith.constant dense<0.000000e+00> : vector<16x1024xf32>
    %5 = tpu.matmul %3, %4, %cst {dimension_numbers = #tpu.dot_dimension_numbers<[1], [0], [0], [1], [0, 0, 1, 1], [], []>} : vector<16x512xbf16>, vector<512x1024xbf16>, vector<16x1024xf32> -> vector<16x1024xf32>
    %c0_4 = arith.constant 0 : index
    %c0_5 = arith.constant 0 : index
    %6 = vector.load %arg4[%c0_4, %c0_5] : memref<1x1024xf32, #tpu.memory_space<vmem>>, vector<1x1024xf32>
    %7 = vector.broadcast %6 : vector<1x1024xf32> to vector<16x1024xf32>
    %8 = arith.addf %5, %7 : vector<16x1024xf32>
    %c0_6 = arith.constant 0 : index
    %c0_7 = arith.constant 0 : index
    %9 = vector.load %arg6[%c0_6, %c0_7] : memref<16x1xf32, #tpu.memory_space<vmem>>, vector<16x1xf32>
    %cst_8 = arith.constant dense<0xFF800000> : vector<16xf32>
    %10 = vector.multi_reduction <maximumf>, %8, %cst_8 [1] : vector<16x1024xf32> to vector<16xf32>
    %11 = vector.shape_cast %10 : vector<16xf32> to vector<16x1xf32>
    %12 = arith.maximumf %9, %11 : vector<16x1xf32>
    %13 = arith.subf %9, %12 : vector<16x1xf32>
    %14 = math.exp %13 : vector<16x1xf32>
    %c0_9 = arith.constant 0 : index
    %c0_10 = arith.constant 0 : index
    %15 = vector.load %arg7[%c0_9, %c0_10] : memref<16x1xf32, #tpu.memory_space<vmem>>, vector<16x1xf32>
    %16 = arith.mulf %15, %14 : vector<16x1xf32>
    %17 = vector.broadcast %12 : vector<16x1xf32> to vector<16x1024xf32>
    %18 = arith.subf %8, %17 : vector<16x1024xf32>
    %19 = math.exp %18 : vector<16x1024xf32>
    %cst_11 = arith.constant dense<0.000000e+00> : vector<16xf32>
    %20 = vector.multi_reduction <add>, %19, %cst_11 [1] : vector<16x1024xf32> to vector<16xf32>
    %21 = vector.shape_cast %20 : vector<16xf32> to vector<16x1xf32>
    %22 = arith.addf %16, %21 : vector<16x1xf32>
    %c0_12 = arith.constant 0 : index
    %c0_13 = arith.constant 0 : index
    %23 = vector.load %arg7[%c0_12, %c0_13] : memref<16x1xf32, #tpu.memory_space<vmem>>, vector<16x1xf32>
    tpu.vector_store %arg7[%c0_12, %c0_13], %22 {strides = array<i32>} : memref<16x1xf32, #tpu.memory_space<vmem>>, vector<16x1xf32>,
    %c0_14 = arith.constant 0 : index
    %c0_15 = arith.constant 0 : index
    %24 = vector.load %arg6[%c0_14, %c0_15] : memref<16x1xf32, #tpu.memory_space<vmem>>, vector<16x1xf32>
    tpu.vector_store %arg6[%c0_14, %c0_15], %12 {strides = array<i32>} : memref<16x1xf32, #tpu.memory_space<vmem>>, vector<16x1xf32>,
    %c1024_i32 = arith.constant 1024 : i32
    %25 = arith.muli %arg1, %c1024_i32 : i32
    %26 = tpu.assume_multiple %25, 128 : i32
    %c0_16 = arith.constant 0 : index
    %27 = arith.index_cast %26 : i32 to index
    %28 = vector.load %arg5[%c0_16, %27] : memref<16x1024xf32, #tpu.memory_space<vmem>>, vector<16x1024xf32>
    tpu.vector_store %arg5[%c0_16, %27], %8 {strides = array<i32>} : memref<16x1024xf32, #tpu.memory_space<vmem>>, vector<16x1024xf32>,
    %c0_i32_17 = arith.constant 0 : i32
    %29 = arith.cmpi eq, %arg1, %c0_i32_17 : i32
    %30 = arith.extui %29 : i1 to i32
    %c0_i32_18 = arith.constant 0 : i32
    %31 = arith.cmpi ne, %30, %c0_i32_18 : i32
    scf.if %31 {
      %c0_19 = arith.constant 0 : index
      %c0_20 = arith.constant 0 : index
      %32 = vector.load %arg6[%c0_19, %c0_20] : memref<16x1xf32, #tpu.memory_space<vmem>>, vector<16x1xf32>
      %c0_21 = arith.constant 0 : index
      %c0_22 = arith.constant 0 : index
      %33 = vector.load %arg7[%c0_21, %c0_22] : memref<16x1xf32, #tpu.memory_space<vmem>>, vector<16x1xf32>
      %34 = math.log %33 : vector<16x1xf32>
      %35 = arith.addf %32, %34 : vector<16x1xf32>
      %c0_23 = arith.constant 0 : index
      %c0_24 = arith.constant 0 : index
      %36 = vector.load %arg5[%c0_23, %c0_24] : memref<16x1024xf32, #tpu.memory_space<vmem>>, vector<16x1024xf32>
      %37 = vector.broadcast %35 : vector<16x1xf32> to vector<16x1024xf32>
      %38 = arith.subf %36, %37 : vector<16x1024xf32>
      %c0_25 = arith.constant 0 : index
      %c0_26 = arith.constant 0 : index
      %39 = vector.load %arg5[%c0_25, %c0_26] : memref<16x1024xf32, #tpu.memory_space<vmem>>, vector<16x1024xf32>
      tpu.vector_store %arg5[%c0_25, %c0_26], %38 {strides = array<i32>} : memref<16x1024xf32, #tpu.memory_space<vmem>>, vector<16x1024xf32>,
    } else {
    }
    return
  }
  func.func @transform_0(%arg0: i32, %arg1: i32) -> (i32, i32) {
    %c0_i32 = arith.constant 0 : i32
    %c0_i32_0 = arith.constant 0 : i32
    return %arg0, %c0_i32 : i32, i32
  }
  func.func @transform_1(%arg0: i32, %arg1: i32) -> (i32, i32) {
    %c0_i32 = arith.constant 0 : i32
    %c0_i32_0 = arith.constant 0 : i32
    return %c0_i32, %arg1 : i32, i32
  }
  func.func @transform_2(%arg0: i32, %arg1: i32) -> (i32, i32) {
    %c0_i32 = arith.constant 0 : i32
    %c0_i32_0 = arith.constant 0 : i32
    return %c0_i32, %arg1 : i32, i32
  }
  func.func @transform_3(%arg0: i32, %arg1: i32) -> (i32, i32) {
    %c0_i32 = arith.constant 0 : i32
    %c0_i32_0 = arith.constant 0 : i32
    return %arg0, %c0_i32 : i32, i32
  }
}

</mosaic_0001>

<bundles_post_ra>
// kernel: tpu_custom_call.1
= control target key start
LH: loop header
LB: loop body
LE: loop exit
PB: predicated region body
PF: predicated region fallthrough
CT: control target
= control target key end

     0   :  { %8 = vsyncpa [#allocation5], 0  ;;  %s2830_s0 = inlined_call_operand.hbm [shape: bf16[16,512], index: 0, kind: input, shape index: {}]   ;;  %s2831_s1 = inlined_call_operand.hbm [shape: bf16[512,1024], index: 1, kind: input, shape index: {}]   ;;  %s2832_s2 = inlined_call_operand.hbm [shape: f32[1,1024], index: 2, kind: input, shape index: {}]   ;;  %s2833_s3 = inlined_call_operand.hbm [shape: f32[16,1024], index: 3, kind: output, shape index: {}]  }
   0x1   :  { %9 = vsyncpa [#allocation8], 0 }
   0x2   :  { %10 = vsyncpa [#allocation6], 0  ;;  %s2647_s12 = smov [#allocation7]  }
   0x3   :  { %s28_s13 = sshll.u32 %s2647_s12, 4  ;;  %s29_s13 = int_to_ptr.vmem [resolvable:$true] %s28_s13 }
   0x4   :  { %s2569_s14 = scalar_lea.vmem %s29_s13, 32768  ;;  %p2574_p1 = scmp.lt.s32.totalorder %s29_s13, %s29_s13 }
   0x5   :  { %p2570_p0 = scmp.ne.s32.totalorder %s29_s13, %s2569_s14  ;;  %p2575_p2 = scmp.lt.s32.totalorder %s2569_s14, %s2569_s14 }
   0x7   :  { %p2576_p3 = por %p2575_p2, %p2574_p1 }
   0x9   :  { %p2577_p4 = pnand %p2576_p3, %p2570_p0 }
   0xb   :  { %2580 = shalt.err (!%p2577_p4)
}
   0xc   :  { %s2648_s15 = smov 512   ;;  %s2649_s16 = smov 32  }
   0xd   :  { %34 = dma.hbm_to_vmem [thread:$0]  %s2831_s1, 32768, %s29_s13, [#allocation8], %s2648_s15, %s2648_s15, %s2649_s16  }
   0xe   :  { %s2650_s19 = smov [#allocation4]  }
   0xf   :  { %s16_s20 = sshll.u32 %s2650_s19, 4  ;;  %s17_s20 = int_to_ptr.vmem [resolvable:$true] %s16_s20 }
  0x10   :  { %s2589_s21 = scalar_lea.vmem %s17_s20, 512  ;;  %p2594_p6 = scmp.lt.s32.totalorder %s17_s20, %s17_s20 }
  0x11   :  { %p2590_p5 = scmp.ne.s32.totalorder %s17_s20, %s2589_s21  ;;  %p2595_p7 = scmp.lt.s32.totalorder %s2589_s21, %s2589_s21 }
  0x13   :  { %p2596_p8 = por %p2595_p7, %p2594_p6 }
  0x15   :  { %p2597_p9 = pnand %p2596_p8, %p2590_p5 }
  0x17   :  { %2600 = shalt.err (!%p2597_p9)
}
  0x18   :  { %s2651_s22 = smov 256   ;;  %s2652_s23 = smov 16  }
  0x19   :  { %22 = dma.hbm_to_vmem [thread:$0]  %s2830_s0, 512, %s17_s20, [#allocation5], %s2651_s22, %s2651_s22, %s2652_s23  }
  0x1a   :  { %s2653_s26 = smov [#allocation9]  }
  0x1b   :  { %s41_s27 = sshll.u32 %s2653_s26, 4  ;;  %s42_s27 = int_to_ptr.vmem [resolvable:$true] %s41_s27 }
  0x1c   :  { %s2609_s1 = scalar_lea.vmem %s42_s27, 128  ;;  %p2614_p11 = scmp.lt.s32.totalorder %s42_s27, %s42_s27 }
  0x1d   :  { %p2610_p10 = scmp.ne.s32.totalorder %s42_s27, %s2609_s1  ;;  %p2615_p12 = scmp.lt.s32.totalorder %s2609_s1, %s2609_s1 }
  0x1f   :  { %p2616_p13 = por %p2615_p12, %p2614_p11 }
  0x21   :  { %p2617_p0 = pnand %p2616_p13, %p2610_p10 }
  0x23   :  { %2620 = shalt.err (!%p2617_p0)
}
  0x24   :  { %44 = dma.hbm_to_vmem [thread:$0]  %s2832_s2, 128, %s42_s27, [#allocation8]  }
  0x25   :  { %2641 = dma.done.wait [#allocation5], 512  }
  0x26   :  { %2642 = vsyncadd [#allocation5], 4294966784 }
  0x27   :  { %2643 = dma.done.wait [#allocation8], 32896  }
  0x28   :  { %2644 = vsyncadd [#allocation8], 4294934400  ;;  %v123_v0 = vld [vmem:[#allocation7 + $0x1c0] sm:$0xff]  ;;  %v2691_v59 = vld [vmem:[#allocation4 + $0xc] ss:$16 sps:$4 sm:$0xff]   ;;  %vm58_vm0 = vcmask 7168  }
  0x29   :  { %v127_v1 = vld [vmem:[#allocation7 + $0x1e0] sm:$0xff]  ;;  %1740 = vmatprep.mubr.bf16.mxu1 %v2691_v59  ;;  %s2657_s0 = smov [#allocation10]  }
  0x2a   :  { %v251_v2 = vld [vmem:[#allocation7 + $0x5c0] sm:$0xff]  ;;  %v2297_v3 = vcombine.high %v123_v0, %v127_v1  ;;  %v2296_v5 = vcombine.low %v123_v0, %v127_v1  ;;  %s2221_s2 = sshll.u32 %s2657_s0, 4  ;;  %s2222_s2 = int_to_ptr.vmem [resolvable:$true] %s2221_s2 }
  0x2b   :  { %v255_v4 = vld [vmem:[#allocation7 + $0x5e0] sm:$0xff]  ;;  %s2621_s30 = scalar_lea.vmem %s2222_s2, 2048  ;;  %p2626_p2 = scmp.lt.s32.totalorder %s2222_s2, %s2222_s2 }
  0x2c   :  { %v115_v6 = vld [vmem:[#allocation7 + $0x180] sm:$0xff]  ;;  %v2425_v8 = vcombine.high %v251_v2, %v255_v4  ;;  %v2424_v9 = vcombine.low %v251_v2, %v255_v4  ;;  %1665 = vmatprep.subr.bf16.mxu0 %v2297_v3  ;;  %p2622_p1 = scmp.ne.s32.totalorder %s2222_s2, %s2621_s30  ;;  %p2627_p3 = scmp.lt.s32.totalorder %s2621_s30, %s2621_s30 }
  0x2d   :  { %v119_v7 = vld [vmem:[#allocation7 + $0x1a0] sm:$0xff]  ;;  %1666 = vmatpush1.bf16.msra.mxu0 %v2296_v5 }
  0x2e   :  { %v2289_v10 = vcombine.high %v115_v6, %v119_v7  ;;  %v243_v11 = vld [vmem:[#allocation7 + $0x580] sm:$0xff]  ;;  %1708 = vmatprep.subr.bf16.mxu1 %v2425_v8  ;;  %v2288_v18 = vcombine.low %v115_v6, %v119_v7  ;;  %p2628_p4 = por %p2627_p3, %p2626_p2 }
  0x2f   :  { %v247_v12 = vld [vmem:[#allocation7 + $0x5a0] sm:$0xff]  ;;  %1709 = vmatpush1.bf16.msra.mxu1 %v2424_v9 }
  0x30   :  { %v107_v13 = vld [vmem:[#allocation7 + $0x140] sm:$0xff]  ;;  %v2417_v14 = vcombine.high %v243_v11, %v247_v12  ;;  %1667 = vmatprep.subr.bf16.mxu0 %v2289_v10  ;;  %v2416_v19 = vcombine.low %v243_v11, %v247_v12  ;;  %p2629_p5 = pnand %p2628_p4, %p2622_p1 }
  0x31   :  { %v111_v15 = vld [vmem:[#allocation7 + $0x160] sm:$0xff]  ;;  %1668 = vmatpush1.bf16.msra.mxu0 %v2288_v18 }
  0x32   :  { %v235_v16 = vld [vmem:[#allocation7 + $0x540] sm:$0xff]  ;;  %v2281_v20 = vcombine.high %v107_v13, %v111_v15  ;;  %1710 = vmatprep.subr.bf16.mxu1 %v2417_v14  ;;  %v2280_v26 = vcombine.low %v107_v13, %v111_v15 }
  0x33   :  { %v239_v17 = vld [vmem:[#allocation7 + $0x560] sm:$0xff]  ;;  %1711 = vmatpush1.bf16.msra.mxu1 %v2416_v19 }
  0x34   :  { %v2409_v21 = vcombine.high %v235_v16, %v239_v17  ;;  %v99_v22 = vld [vmem:[#allocation7 + $0x100] sm:$0xff]  ;;  %1669 = vmatprep.subr.bf16.mxu0 %v2281_v20  ;;  %v2408_v27 = vcombine.low %v235_v16, %v239_v17 }
  0x35   :  { %v103_v23 = vld [vmem:[#allocation7 + $0x120] sm:$0xff]  ;;  %1670 = vmatpush1.bf16.msra.mxu0 %v2280_v26 }
  0x36   :  { %v227_v24 = vld [vmem:[#allocation7 + $0x500] sm:$0xff]  ;;  %v2273_v28 = vcombine.high %v99_v22, %v103_v23  ;;  %1712 = vmatprep.subr.bf16.mxu1 %v2409_v21  ;;  %v2272_v34 = vcombine.low %v99_v22, %v103_v23 }
  0x37   :  { %v231_v25 = vld [vmem:[#allocation7 + $0x520] sm:$0xff]  ;;  %1713 = vmatpush1.bf16.msra.mxu1 %v2408_v27 }
  0x38   :  { %v2401_v29 = vcombine.high %v227_v24, %v231_v25  ;;  %v91_v30 = vld [vmem:[#allocation7 + $0xc0] sm:$0xff]  ;;  %1671 = vmatprep.subr.bf16.mxu0 %v2273_v28  ;;  %v2400_v35 = vcombine.low %v227_v24, %v231_v25 }
  0x39   :  { %v95_v31 = vld [vmem:[#allocation7 + $0xe0] sm:$0xff]  ;;  %1672 = vmatpush1.bf16.msra.mxu0 %v2272_v34 }
  0x3a   :  { %v219_v32 = vld [vmem:[#allocation7 + $0x4c0] sm:$0xff]  ;;  %v2265_v36 = vcombine.high %v91_v30, %v95_v31  ;;  %1714 = vmatprep.subr.bf16.mxu1 %v2401_v29  ;;  %v2264_v42 = vcombine.low %v91_v30, %v95_v31 }
  0x3b   :  { %v223_v33 = vld [vmem:[#allocation7 + $0x4e0] sm:$0xff]  ;;  %1715 = vmatpush1.bf16.msra.mxu1 %v2400_v35 }
  0x3c   :  { %v2393_v37 = vcombine.high %v219_v32, %v223_v33  ;;  %v83_v38 = vld [vmem:[#allocation7 + $0x80] sm:$0xff]  ;;  %1673 = vmatprep.subr.bf16.mxu0 %v2265_v36  ;;  %v2392_v43 = vcombine.low %v219_v32, %v223_v33 }
  0x3d   :  { %v87_v39 = vld [vmem:[#allocation7 + $0xa0] sm:$0xff]  ;;  %1674 = vmatpush1.bf16.msra.mxu0 %v2264_v42 }
  0x3e   :  { %v211_v40 = vld [vmem:[#allocation7 + $0x480] sm:$0xff]  ;;  %v2257_v44 = vcombine.high %v83_v38, %v87_v39  ;;  %1716 = vmatprep.subr.bf16.mxu1 %v2393_v37  ;;  %v2256_v50 = vcombine.low %v83_v38, %v87_v39 }
  0x3f   :  { %v215_v41 = vld [vmem:[#allocation7 + $0x4a0] sm:$0xff]  ;;  %1717 = vmatpush1.bf16.msra.mxu1 %v2392_v43 }
  0x40   :  { %v2385_v45 = vcombine.high %v211_v40, %v215_v41  ;;  %v75_v46 = vld [vmem:[#allocation7 + $0x40] sm:$0xff]  ;;  %1675 = vmatprep.subr.bf16.mxu0 %v2257_v44  ;;  %v2384_v52 = vcombine.low %v211_v40, %v215_v41 }
  0x41   :  { %v79_v47 = vld [vmem:[#allocation7 + $0x60] sm:$0xff]  ;;  %1676 = vmatpush1.bf16.msra.mxu0 %v2256_v50 }
  0x42   :  { %v203_v48 = vld [vmem:[#allocation7 + $0x440] sm:$0xff]  ;;  %v2249_v53 = vcombine.high %v75_v46, %v79_v47  ;;  %1718 = vmatprep.subr.bf16.mxu1 %v2385_v45  ;;  %v2248_v60 = vcombine.low %v75_v46, %v79_v47 }
  0x43   :  { %v207_v49 = vld [vmem:[#allocation7 + $0x460] sm:$0xff]  ;;  %1719 = vmatpush1.bf16.msra.mxu1 %v2384_v52 }
  0x44   :  { %v67_v51 = vld [vmem:[#allocation7] sm:$0xff]  ;;  %v2377_v55 = vcombine.high %v203_v48, %v207_v49  ;;  %1677 = vmatprep.subr.bf16.mxu0 %v2249_v53  ;;  %v2376_v61 = vcombine.low %v203_v48, %v207_v49 }
  0x45   :  { %v71_v54 = vld [vmem:[#allocation7 + $0x20] sm:$0xff]  ;;  %1678 = vmatpush1.bf16.msra.mxu0 %v2248_v60 }
  0x46   :  { %v2689_v56 = vld [vmem:[#allocation4 + $0x4] ss:$16 sps:$4 sm:$0xff]   ;;  %v2241_v62 = vcombine.high %v67_v51, %v71_v54  ;;  %1720 = vmatprep.subr.bf16.mxu1 %v2377_v55  ;;  %v2240_v4 = vcombine.low %v67_v51, %v71_v54 }
  0x47   :  { %v195_v57 = vld [vmem:[#allocation7 + $0x400] sm:$0xff]  ;;  %1697 = vmatprep.mubr.bf16.mxu0 %v2689_v56  ;;  %1721 = vmatpush1.bf16.msra.mxu1 %v2376_v61 }
  0x48   :  { %v199_v58 = vld [vmem:[#allocation7 + $0x420] sm:$0xff]  ;;  %1679 = vmatprep.subr.bf16.mxu0 %v2241_v62 }
  0x49   :  { %v2369_v63 = vcombine.high %v195_v57, %v199_v58  ;;  %v187_v0 = vld [vmem:[#allocation7 + $0x3c0] sm:$0xff]  ;;  %v2368_v5 = vcombine.low %v195_v57, %v199_v58  ;;  %1680 = vmatpush1.bf16.msra.mxu0 %v2240_v4  ;;  %v252_v4 = vld [vmem:[#allocation7 + $0x5c8] sm:$0xff] }
  0x4a   :  { %v191_v1 = vld [vmem:[#allocation7 + $0x3e0] sm:$0xff] }
  0x4b   :  { %v315_v2 = vld [vmem:[#allocation7 + $0x7c0] sm:$0xff]  ;;  %v2361_v6 = vcombine.high %v187_v0, %v191_v1  ;;  %1722 = vmatprep.subr.bf16.mxu1 %v2369_v63  ;;  %v2360_v12 = vcombine.low %v187_v0, %v191_v1 }
  0x4c   :  { %v319_v3 = vld [vmem:[#allocation7 + $0x7e0] sm:$0xff]  ;;  %1723 = vmatpush1.bf16.msra.mxu1 %v2368_v5  ;;  %v256_v5 = vld [vmem:[#allocation7 + $0x5e8] sm:$0xff] }
  0x4d   :  { %v2489_v7 = vcombine.high %v315_v2, %v319_v3  ;;  %v179_v8 = vld [vmem:[#allocation7 + $0x380] sm:$0xff]  ;;  %1681 = vmatprep.subr.bf16.mxu0 %v2361_v6  ;;  %v2488_v13 = vcombine.low %v315_v2, %v319_v3  ;;  %v124_v2 = vld [vmem:[#allocation7 + $0x1c8] sm:$0xff] }
  0x4e   :  { %v183_v9 = vld [vmem:[#allocation7 + $0x3a0] sm:$0xff]  ;;  %1682 = vmatpush2.bf16.msra.mxu0 %v2360_v12  ;;  %v128_v3 = vld [vmem:[#allocation7 + $0x1e8] sm:$0xff] }
  0x4f   :  { %v307_v10 = vld [vmem:[#allocation7 + $0x780] sm:$0xff]  ;;  %v2353_v14 = vcombine.high %v179_v8, %v183_v9  ;;  %1724 = vmatprep.subr.bf16.mxu1 %v2489_v7  ;;  %v2352_v20 = vcombine.low %v179_v8, %v183_v9  ;;  %v2299_v8 = vcombine.high %v124_v2, %v128_v3  ;;  %v2427_v9 = vcombine.high %v252_v4, %v256_v5 }
  0x50   :  { %v311_v11 = vld [vmem:[#allocation7 + $0x7a0] sm:$0xff]  ;;  %1725 = vmatpush2.bf16.msra.mxu1 %v2488_v13  ;;  %v244_v13 = vld [vmem:[#allocation7 + $0x588] sm:$0xff] }
  0x51   :  { %v2481_v15 = vcombine.high %v307_v10, %v311_v11  ;;  %v171_v16 = vld [vmem:[#allocation7 + $0x340] sm:$0xff]  ;;  %1683 = vmatprep.subr.bf16.mxu0 %v2353_v14  ;;  %v2480_v21 = vcombine.low %v307_v10, %v311_v11  ;;  %v116_v10 = vld [vmem:[#allocation7 + $0x188] sm:$0xff] }
  0x52   :  { %v175_v17 = vld [vmem:[#allocation7 + $0x360] sm:$0xff]  ;;  %1684 = vmatpush2.bf16.msra.mxu0 %v2352_v20  ;;  %v120_v11 = vld [vmem:[#allocation7 + $0x1a8] sm:$0xff] }
  0x53   :  { %v299_v18 = vld [vmem:[#allocation7 + $0x740] sm:$0xff]  ;;  %v2345_v22 = vcombine.high %v171_v16, %v175_v17  ;;  %1726 = vmatprep.subr.bf16.mxu1 %v2481_v15  ;;  %v2344_v28 = vcombine.low %v171_v16, %v175_v17  ;;  %v248_v14 = vld [vmem:[#allocation7 + $0x5a8] sm:$0xff]  ;;  %v2298_v16 = vcombine.low %v124_v2, %v128_v3  ;;  %v2426_v17 = vcombine.low %v252_v4, %v256_v5 }
  0x54   :  { %v303_v19 = vld [vmem:[#allocation7 + $0x760] sm:$0xff]  ;;  %1727 = vmatpush2.bf16.msra.mxu1 %v2480_v21  ;;  %v2697_v15 = vld [vmem:[#allocation4 + $0x8] ss:$16 sps:$4 sm:$0xff]  }
  0x55   :  { %v2473_v23 = vcombine.high %v299_v18, %v303_v19  ;;  %v163_v24 = vld [vmem:[#allocation7 + $0x300] sm:$0xff]  ;;  %1685 = vmatprep.subr.bf16.mxu0 %v2345_v22  ;;  %v2472_v29 = vcombine.low %v299_v18, %v303_v19  ;;  %v2291_v18 = vcombine.high %v116_v10, %v120_v11  ;;  %v2419_v19 = vcombine.high %v244_v13, %v248_v14  ;;  %v108_v20 = vld [vmem:[#allocation7 + $0x148] sm:$0xff] }
  0x56   :  { %v167_v25 = vld [vmem:[#allocation7 + $0x320] sm:$0xff]  ;;  %1686 = vmatpush2.bf16.msra.mxu0 %v2344_v28  ;;  %v112_v21 = vld [vmem:[#allocation7 + $0x168] sm:$0xff] }
  0x57   :  { %v291_v26 = vld [vmem:[#allocation7 + $0x700] sm:$0xff]  ;;  %v2337_v30 = vcombine.high %v163_v24, %v167_v25  ;;  %1728 = vmatprep.subr.bf16.mxu1 %v2473_v23  ;;  %v2336_v36 = vcombine.low %v163_v24, %v167_v25  ;;  %v236_v22 = vld [vmem:[#allocation7 + $0x548] sm:$0xff]  ;;  %v2290_v24 = vcombine.low %v116_v10, %v120_v11  ;;  %v2418_v25 = vcombine.low %v244_v13, %v248_v14 }
  0x58   :  { %v295_v27 = vld [vmem:[#allocation7 + $0x720] sm:$0xff]  ;;  %1729 = vmatpush2.bf16.msra.mxu1 %v2472_v29  ;;  %v240_v23 = vld [vmem:[#allocation7 + $0x568] sm:$0xff] }
  0x59   :  { %v2465_v31 = vcombine.high %v291_v26, %v295_v27  ;;  %v155_v32 = vld [vmem:[#allocation7 + $0x2c0] sm:$0xff]  ;;  %1687 = vmatprep.subr.bf16.mxu0 %v2337_v30  ;;  %v2464_v37 = vcombine.low %v291_v26, %v295_v27  ;;  %v2283_v26 = vcombine.high %v108_v20, %v112_v21  ;;  %v2411_v27 = vcombine.high %v236_v22, %v240_v23  ;;  %v100_v28 = vld [vmem:[#allocation7 + $0x108] sm:$0xff] }
  0x5a   :  { %v159_v33 = vld [vmem:[#allocation7 + $0x2e0] sm:$0xff]  ;;  %1688 = vmatpush2.bf16.msra.mxu0 %v2336_v36  ;;  %v104_v29 = vld [vmem:[#allocation7 + $0x128] sm:$0xff] }
  0x5b   :  { %v283_v34 = vld [vmem:[#allocation7 + $0x6c0] sm:$0xff]  ;;  %v2329_v38 = vcombine.high %v155_v32, %v159_v33  ;;  %1730 = vmatprep.subr.bf16.mxu1 %v2465_v31  ;;  %v2328_v44 = vcombine.low %v155_v32, %v159_v33  ;;  %v228_v30 = vld [vmem:[#allocation7 + $0x508] sm:$0xff]  ;;  %v2282_v32 = vcombine.low %v108_v20, %v112_v21  ;;  %v2410_v33 = vcombine.low %v236_v22, %v240_v23 }
  0x5c   :  { %v287_v35 = vld [vmem:[#allocation7 + $0x6e0] sm:$0xff]  ;;  %1731 = vmatpush2.bf16.msra.mxu1 %v2464_v37  ;;  %v232_v31 = vld [vmem:[#allocation7 + $0x528] sm:$0xff] }
  0x5d   :  { %v2457_v39 = vcombine.high %v283_v34, %v287_v35  ;;  %v147_v40 = vld [vmem:[#allocation7 + $0x280] sm:$0xff]  ;;  %1689 = vmatprep.subr.bf16.mxu0 %v2329_v38  ;;  %v2456_v45 = vcombine.low %v283_v34, %v287_v35  ;;  %v2275_v34 = vcombine.high %v100_v28, %v104_v29  ;;  %v2403_v35 = vcombine.high %v228_v30, %v232_v31  ;;  %v92_v36 = vld [vmem:[#allocation7 + $0xc8] sm:$0xff] }
  0x5e   :  { %v151_v41 = vld [vmem:[#allocation7 + $0x2a0] sm:$0xff]  ;;  %1690 = vmatpush2.bf16.msra.mxu0 %v2328_v44  ;;  %v96_v37 = vld [vmem:[#allocation7 + $0xe8] sm:$0xff] }
  0x5f   :  { %v275_v42 = vld [vmem:[#allocation7 + $0x680] sm:$0xff]  ;;  %v2321_v46 = vcombine.high %v147_v40, %v151_v41  ;;  %1732 = vmatprep.subr.bf16.mxu1 %v2457_v39  ;;  %v2320_v52 = vcombine.low %v147_v40, %v151_v41  ;;  %v220_v38 = vld [vmem:[#allocation7 + $0x4c8] sm:$0xff]  ;;  %v2274_v40 = vcombine.low %v100_v28, %v104_v29  ;;  %v2402_v41 = vcombine.low %v228_v30, %v232_v31 }
  0x60   :  { %v279_v43 = vld [vmem:[#allocation7 + $0x6a0] sm:$0xff]  ;;  %1733 = vmatpush2.bf16.msra.mxu1 %v2456_v45  ;;  %v224_v39 = vld [vmem:[#allocation7 + $0x4e8] sm:$0xff] }
  0x61   :  { %v2449_v47 = vcombine.high %v275_v42, %v279_v43  ;;  %v139_v48 = vld [vmem:[#allocation7 + $0x240] sm:$0xff]  ;;  %1691 = vmatprep.subr.bf16.mxu0 %v2321_v46  ;;  %v2448_v53 = vcombine.low %v275_v42, %v279_v43  ;;  %v2267_v42 = vcombine.high %v92_v36, %v96_v37  ;;  %v2395_v43 = vcombine.high %v220_v38, %v224_v39  ;;  %v84_v44 = vld [vmem:[#allocation7 + $0x88] sm:$0xff] }
  0x62   :  { %v143_v49 = vld [vmem:[#allocation7 + $0x260] sm:$0xff]  ;;  %1692 = vmatpush2.bf16.msra.mxu0 %v2320_v52  ;;  %v88_v45 = vld [vmem:[#allocation7 + $0xa8] sm:$0xff] }
  0x63   :  { %v267_v50 = vld [vmem:[#allocation7 + $0x640] sm:$0xff]  ;;  %v2313_v54 = vcombine.high %v139_v48, %v143_v49  ;;  %1734 = vmatprep.subr.bf16.mxu1 %v2449_v47  ;;  %v2312_v62 = vcombine.low %v139_v48, %v143_v49  ;;  %v212_v46 = vld [vmem:[#allocation7 + $0x488] sm:$0xff]  ;;  %v2266_v48 = vcombine.low %v92_v36, %v96_v37  ;;  %v2394_v49 = vcombine.low %v220_v38, %v224_v39 }
  0x64   :  { %v271_v51 = vld [vmem:[#allocation7 + $0x660] sm:$0xff]  ;;  %1735 = vmatpush2.bf16.msra.mxu1 %v2448_v53  ;;  %v216_v47 = vld [vmem:[#allocation7 + $0x4a8] sm:$0xff] }
  0x65   :  { %v2441_v55 = vcombine.high %v267_v50, %v271_v51  ;;  %v131_v57 = vld [vmem:[#allocation7 + $0x200] sm:$0xff]  ;;  %1693 = vmatprep.subr.bf16.mxu0 %v2313_v54  ;;  %v2440_v63 = vcombine.low %v267_v50, %v271_v51  ;;  %v2259_v50 = vcombine.high %v84_v44, %v88_v45  ;;  %v2387_v51 = vcombine.high %v212_v46, %v216_v47  ;;  %v76_v52 = vld [vmem:[#allocation7 + $0x48] sm:$0xff] }
  0x66   :  { %v135_v58 = vld [vmem:[#allocation7 + $0x220] sm:$0xff]  ;;  %1694 = vmatpush2.bf16.msra.mxu0 %v2312_v62  ;;  %v80_v53 = vld [vmem:[#allocation7 + $0x68] sm:$0xff] }
  0x67   :  { %v259_v60 = vld [vmem:[#allocation7 + $0x600] sm:$0xff]  ;;  %v2305_v0 = vcombine.high %v131_v57, %v135_v58  ;;  %1736 = vmatprep.subr.bf16.mxu1 %v2441_v55  ;;  %v2304_v6 = vcombine.low %v131_v57, %v135_v58  ;;  %v204_v54 = vld [vmem:[#allocation7 + $0x448] sm:$0xff]  ;;  %v2258_v57 = vcombine.low %v84_v44, %v88_v45  ;;  %v2386_v58 = vcombine.low %v212_v46, %v216_v47 }
  0x68   :  { %v263_v61 = vld [vmem:[#allocation7 + $0x620] sm:$0xff]  ;;  %1737 = vmatpush2.bf16.msra.mxu1 %v2440_v63  ;;  %v208_v55 = vld [vmem:[#allocation7 + $0x468] sm:$0xff]  ;;  %v2250_v2 = vcombine.low %v76_v52, %v80_v53 }
  0x69   :  { %v2433_v1 = vcombine.high %v259_v60, %v263_v61  ;;  %1695 = vmatprep.subr.bf16.mxu0 %v2305_v0  ;;  %v2432_v7 = vcombine.low %v259_v60, %v263_v61  ;;  %v2695_v12 = vld [vmem:[#allocation4] ss:$16 sps:$4 sm:$0xff]   ;;  %v2251_v60 = vcombine.high %v76_v52, %v80_v53  ;;  %v2379_v61 = vcombine.high %v204_v54, %v208_v55  ;;  %v68_v62 = vld [vmem:[#allocation7 + $0x8] sm:$0xff] }
  0x6a   :  { %1696 = vmatpush2.bf16.msra.mxu0 %v2304_v6  ;;  %v72_v63 = vld [vmem:[#allocation7 + $0x28] sm:$0xff]  ;;  %v2378_v3 = vcombine.low %v204_v54, %v208_v55 }
  0x6b   :  { %1738 = vmatprep.subr.bf16.mxu1 %v2433_v1  ;;  %1751 = vmatprep.subr.bf16.mxu0 %v2299_v8  ;;  %v196_v0 = vld [vmem:[#allocation7 + $0x408] sm:$0xff]  ;;  %v2243_v4 = vcombine.high %v68_v62, %v72_v63  ;;  %v2242_v10 = vcombine.low %v68_v62, %v72_v63 }
  0x6c   :  { %1739 = vmatpush2.bf16.msra.mxu1 %v2432_v7  ;;  %v200_v1 = vld [vmem:[#allocation7 + $0x428] sm:$0xff] }
  0x6d   :  { %1794 = vmatprep.subr.bf16.mxu1 %v2427_v9  ;;  %1698 = vmatmul.mubr.bf16.vlgmr.msra.gmra.mxu0 %v2695_v12  ;;  %v2371_v5 = vcombine.high %v196_v0, %v200_v1  ;;  %v188_v6 = vld [vmem:[#allocation7 + $0x3c8] sm:$0xff]  ;;  %v2370_v11 = vcombine.low %v196_v0, %v200_v1 }
  0x6e   :  { %1752 = vmatpush1.bf16.msra.mxu0 %v2298_v16  ;;  %1783 = vmatprep.mubr.bf16.mxu0 %v2689_v56  ;;  %v192_v7 = vld [vmem:[#allocation7 + $0x3e8] sm:$0xff] }
  0x6f   :  { %1741 = vmatmul.mubr.bf16.vlgmr.msra.gmra.mxu1 %v2697_v15  ;;  %1753 = vmatprep.subr.bf16.mxu0 %v2291_v18  ;;  %v316_v8 = vld [vmem:[#allocation7 + $0x7c8] sm:$0xff]  ;;  %v2363_v13 = vcombine.high %v188_v6, %v192_v7  ;;  %v2362_v20 = vcombine.low %v188_v6, %v192_v7 }
  0x70   :  { %1795 = vmatpush1.bf16.msra.mxu1 %v2426_v17  ;;  %1826 = vmatprep.mubr.bf16.mxu1 %v2691_v59  ;;  %v320_v9 = vld [vmem:[#allocation7 + $0x7e8] sm:$0xff] }
  0x71   :  { %1796 = vmatprep.subr.bf16.mxu1 %v2419_v19  ;;  %v2491_v14 = vcombine.high %v316_v8, %v320_v9  ;;  %v180_v16 = vld [vmem:[#allocation7 + $0x388] sm:$0xff]  ;;  %v2490_v21 = vcombine.low %v316_v8, %v320_v9 }
  0x72   :  { %1754 = vmatpush1.bf16.msra.mxu0 %v2290_v24  ;;  %v184_v17 = vld [vmem:[#allocation7 + $0x3a8] sm:$0xff] }
  0x73   :  { %1755 = vmatprep.subr.bf16.mxu0 %v2283_v26  ;;  %v308_v18 = vld [vmem:[#allocation7 + $0x788] sm:$0xff]  ;;  %v2355_v22 = vcombine.high %v180_v16, %v184_v17  ;;  %v2354_v28 = vcombine.low %v180_v16, %v184_v17 }
  0x74   :  { %1797 = vmatpush1.bf16.msra.mxu1 %v2418_v25  ;;  %v312_v19 = vld [vmem:[#allocation7 + $0x7a8] sm:$0xff] }
  0x75   :  { %1798 = vmatprep.subr.bf16.mxu1 %v2411_v27  ;;  %v2483_v23 = vcombine.high %v308_v18, %v312_v19  ;;  %v172_v24 = vld [vmem:[#allocation7 + $0x348] sm:$0xff]  ;;  %v2482_v29 = vcombine.low %v308_v18, %v312_v19 }
  0x76   :  { %1756 = vmatpush1.bf16.msra.mxu0 %v2282_v32  ;;  %v176_v25 = vld [vmem:[#allocation7 + $0x368] sm:$0xff] }
  0x77   :  { %1757 = vmatprep.subr.bf16.mxu0 %v2275_v34  ;;  %v300_v26 = vld [vmem:[#allocation7 + $0x748] sm:$0xff]  ;;  %v2347_v30 = vcombine.high %v172_v24, %v176_v25  ;;  %v2346_v36 = vcombine.low %v172_v24, %v176_v25 }
  0x78   :  { %1799 = vmatpush1.bf16.msra.mxu1 %v2410_v33  ;;  %v304_v27 = vld [vmem:[#allocation7 + $0x768] sm:$0xff] }
  0x79   :  { %1800 = vmatprep.subr.bf16.mxu1 %v2403_v35  ;;  %v2475_v31 = vcombine.high %v300_v26, %v304_v27  ;;  %v164_v32 = vld [vmem:[#allocation7 + $0x308] sm:$0xff]  ;;  %v2474_v37 = vcombine.low %v300_v26, %v304_v27 }
  0x7a   :  { %1758 = vmatpush1.bf16.msra.mxu0 %v2274_v40  ;;  %v168_v33 = vld [vmem:[#allocation7 + $0x328] sm:$0xff] }
  0x7b   :  { %1759 = vmatprep.subr.bf16.mxu0 %v2267_v42  ;;  %v292_v34 = vld [vmem:[#allocation7 + $0x708] sm:$0xff]  ;;  %v2339_v38 = vcombine.high %v164_v32, %v168_v33  ;;  %v2338_v44 = vcombine.low %v164_v32, %v168_v33 }
  0x7c   :  { %1801 = vmatpush1.bf16.msra.mxu1 %v2402_v41  ;;  %v296_v35 = vld [vmem:[#allocation7 + $0x728] sm:$0xff] }
  0x7d   :  { %1802 = vmatprep.subr.bf16.mxu1 %v2395_v43  ;;  %v2467_v39 = vcombine.high %v292_v34, %v296_v35  ;;  %v156_v40 = vld [vmem:[#allocation7 + $0x2c8] sm:$0xff]  ;;  %v2466_v45 = vcombine.low %v292_v34, %v296_v35 }
  0x7e   :  { %1760 = vmatpush1.bf16.msra.mxu0 %v2266_v48  ;;  %v160_v41 = vld [vmem:[#allocation7 + $0x2e8] sm:$0xff] }
  0x7f   :  { %1761 = vmatprep.subr.bf16.mxu0 %v2259_v50  ;;  %v284_v42 = vld [vmem:[#allocation7 + $0x6c8] sm:$0xff]  ;;  %v2331_v46 = vcombine.high %v156_v40, %v160_v41  ;;  %v2330_v52 = vcombine.low %v156_v40, %v160_v41 }
  0x80   :  { %1803 = vmatpush1.bf16.msra.mxu1 %v2394_v49  ;;  %v288_v43 = vld [vmem:[#allocation7 + $0x6e8] sm:$0xff] }
  0x81   :  { %1804 = vmatprep.subr.bf16.mxu1 %v2387_v51  ;;  %v2459_v47 = vcombine.high %v284_v42, %v288_v43  ;;  %v148_v48 = vld [vmem:[#allocation7 + $0x288] sm:$0xff]  ;;  %v2458_v53 = vcombine.low %v284_v42, %v288_v43 }
  0x82   :  { %1762 = vmatpush1.bf16.msra.mxu0 %v2258_v57  ;;  %v152_v49 = vld [vmem:[#allocation7 + $0x2a8] sm:$0xff] }
  0x83   :  { %1763 = vmatprep.subr.bf16.mxu0 %v2251_v60  ;;  %v276_v50 = vld [vmem:[#allocation7 + $0x688] sm:$0xff]  ;;  %v2323_v54 = vcombine.high %v148_v48, %v152_v49  ;;  %v2322_v62 = vcombine.low %v148_v48, %v152_v49 }
  0x84   :  { %1805 = vmatpush1.bf16.msra.mxu1 %v2386_v58  ;;  %v280_v51 = vld [vmem:[#allocation7 + $0x6a8] sm:$0xff] }
  0x85   :  { %1806 = vmatprep.subr.bf16.mxu1 %v2379_v61  ;;  %v2451_v55 = vcombine.high %v276_v50, %v280_v51  ;;  %v140_v57 = vld [vmem:[#allocation7 + $0x248] sm:$0xff]  ;;  %v2450_v63 = vcombine.low %v276_v50, %v280_v51  ;;  %v85_v50 = vld [vmem:[#allocation7 + $0x90] sm:$0xff] }
  0x86   :  { %1764 = vmatpush1.bf16.msra.mxu0 %v2250_v2  ;;  %v144_v58 = vld [vmem:[#allocation7 + $0x268] sm:$0xff]  ;;  %v89_v51 = vld [vmem:[#allocation7 + $0xb0] sm:$0xff] }
  0x87   :  { %1765 = vmatprep.subr.bf16.mxu0 %v2243_v4  ;;  %v268_v60 = vld [vmem:[#allocation7 + $0x648] sm:$0xff]  ;;  %v2315_v0 = vcombine.high %v140_v57, %v144_v58  ;;  %v2314_v6 = vcombine.low %v140_v57, %v144_v58  ;;  %v2261_v57 = vcombine.high %v85_v50, %v89_v51 }
  0x88   :  { %1807 = vmatpush1.bf16.msra.mxu1 %v2378_v3  ;;  %v272_v61 = vld [vmem:[#allocation7 + $0x668] sm:$0xff] }
  0x89   :  { %1808 = vmatprep.subr.bf16.mxu1 %v2371_v5  ;;  %v2443_v1 = vcombine.high %v268_v60, %v272_v61  ;;  %v132_v2 = vld [vmem:[#allocation7 + $0x208] sm:$0xff]  ;;  %v2442_v7 = vcombine.low %v268_v60, %v272_v61  ;;  %v77_v60 = vld [vmem:[#allocation7 + $0x50] sm:$0xff] }
  0x8a   :  { %1766 = vmatpush1.bf16.msra.mxu0 %v2242_v10  ;;  %v136_v3 = vld [vmem:[#allocation7 + $0x228] sm:$0xff]  ;;  %v125_v10 = vld [vmem:[#allocation7 + $0x1d0] sm:$0xff] }
  0x8b   :  { %1767 = vmatprep.subr.bf16.mxu0 %v2363_v13  ;;  %v260_v4 = vld [vmem:[#allocation7 + $0x608] sm:$0xff]  ;;  %v2307_v8 = vcombine.high %v132_v2, %v136_v3  ;;  %v253_v13 = vld [vmem:[#allocation7 + $0x5d0] sm:$0xff]  ;;  %v2306_v16 = vcombine.low %v132_v2, %v136_v3 }
  0x8c   :  { %1809 = vmatpush1.bf16.msra.mxu1 %v2370_v11  ;;  %v264_v5 = vld [vmem:[#allocation7 + $0x628] sm:$0xff]  ;;  %v129_v11 = vld [vmem:[#allocation7 + $0x1f0] sm:$0xff] }
  0x8d   :  { %1810 = vmatprep.subr.bf16.mxu1 %v2491_v14  ;;  %v2435_v9 = vcombine.high %v260_v4, %v264_v5  ;;  %v257_v14 = vld [vmem:[#allocation7 + $0x5f0] sm:$0xff]  ;;  %v2434_v17 = vcombine.low %v260_v4, %v264_v5  ;;  %v2301_v18 = vcombine.high %v125_v10, %v129_v11  ;;  %v2300_v24 = vcombine.low %v125_v10, %v129_v11 }
  0x8e   :  { %1768 = vmatpush2.bf16.msra.mxu0 %v2362_v20  ;;  %v2429_v19 = vcombine.high %v253_v13, %v257_v14  ;;  %v117_v20 = vld [vmem:[#allocation7 + $0x190] sm:$0xff]  ;;  %v2428_v25 = vcombine.low %v253_v13, %v257_v14 }
  0x8f   :  { %1769 = vmatprep.subr.bf16.mxu0 %v2355_v22  ;;  %v245_v22 = vld [vmem:[#allocation7 + $0x590] sm:$0xff] }
  0x90   :  { %1811 = vmatpush2.bf16.msra.mxu1 %v2490_v21  ;;  %v121_v21 = vld [vmem:[#allocation7 + $0x1b0] sm:$0xff] }
  0x91   :  { %1812 = vmatprep.subr.bf16.mxu1 %v2483_v23  ;;  %v249_v23 = vld [vmem:[#allocation7 + $0x5b0] sm:$0xff]  ;;  %v2293_v26 = vcombine.high %v117_v20, %v121_v21  ;;  %v2292_v32 = vcombine.low %v117_v20, %v121_v21 }
  0x92   :  { %1770 = vmatpush2.bf16.msra.mxu0 %v2354_v28  ;;  %v2421_v27 = vcombine.high %v245_v22, %v249_v23  ;;  %v109_v28 = vld [vmem:[#allocation7 + $0x150] sm:$0xff]  ;;  %v2420_v33 = vcombine.low %v245_v22, %v249_v23 }
  0x93   :  { %1771 = vmatprep.subr.bf16.mxu0 %v2347_v30  ;;  %v237_v30 = vld [vmem:[#allocation7 + $0x550] sm:$0xff] }
  0x94   :  { %1813 = vmatpush2.bf16.msra.mxu1 %v2482_v29  ;;  %v113_v29 = vld [vmem:[#allocation7 + $0x170] sm:$0xff] }
  0x95   :  { %1814 = vmatprep.subr.bf16.mxu1 %v2475_v31  ;;  %v241_v31 = vld [vmem:[#allocation7 + $0x570] sm:$0xff]  ;;  %v2285_v34 = vcombine.high %v109_v28, %v113_v29  ;;  %v2284_v40 = vcombine.low %v109_v28, %v113_v29 }
  0x96   :  { %1772 = vmatpush2.bf16.msra.mxu0 %v2346_v36  ;;  %v2413_v35 = vcombine.high %v237_v30, %v241_v31  ;;  %v101_v36 = vld [vmem:[#allocation7 + $0x110] sm:$0xff]  ;;  %v2412_v41 = vcombine.low %v237_v30, %v241_v31 }
  0x97   :  { %1773 = vmatprep.subr.bf16.mxu0 %v2339_v38  ;;  %v229_v38 = vld [vmem:[#allocation7 + $0x510] sm:$0xff] }
  0x98   :  { %1815 = vmatpush2.bf16.msra.mxu1 %v2474_v37  ;;  %v105_v37 = vld [vmem:[#allocation7 + $0x130] sm:$0xff] }
  0x99   :  { %1816 = vmatprep.subr.bf16.mxu1 %v2467_v39  ;;  %v233_v39 = vld [vmem:[#allocation7 + $0x530] sm:$0xff]  ;;  %v2277_v42 = vcombine.high %v101_v36, %v105_v37  ;;  %v2276_v48 = vcombine.low %v101_v36, %v105_v37 }
  0x9a   :  { %1774 = vmatpush2.bf16.msra.mxu0 %v2338_v44  ;;  %v2405_v43 = vcombine.high %v229_v38, %v233_v39  ;;  %v93_v44 = vld [vmem:[#allocation7 + $0xd0] sm:$0xff] }
  0x9b   :  { %1775 = vmatprep.subr.bf16.mxu0 %v2331_v46  ;;  %v221_v46 = vld [vmem:[#allocation7 + $0x4d0] sm:$0xff] }
  0x9c   :  { %1817 = vmatpush2.bf16.msra.mxu1 %v2466_v45  ;;  %v97_v45 = vld [vmem:[#allocation7 + $0xf0] sm:$0xff] }
  0x9d   :  { %1818 = vmatprep.subr.bf16.mxu1 %v2459_v47  ;;  %v225_v47 = vld [vmem:[#allocation7 + $0x4f0] sm:$0xff]  ;;  %v2269_v49 = vcombine.high %v93_v44, %v97_v45 }
  0x9e   :  { %1776 = vmatpush2.bf16.msra.mxu0 %v2330_v52  ;;  %v213_v52 = vld [vmem:[#allocation7 + $0x490] sm:$0xff] }
  0x9f   :  { %1777 = vmatprep.subr.bf16.mxu0 %v2323_v54  ;;  %v2268_v54 = vcombine.low %v93_v44, %v97_v45  ;;  %v81_v61 = vld [vmem:[#allocation7 + $0x70] sm:$0xff] }
  0xa0   :  { %1819 = vmatpush2.bf16.msra.mxu1 %v2458_v53  ;;  %v217_v53 = vld [vmem:[#allocation7 + $0x4b0] sm:$0xff]  ;;  %v2253_v2 = vcombine.high %v77_v60, %v81_v61 }
  0xa1   :  { %1820 = vmatprep.subr.bf16.mxu1 %v2451_v55  ;;  %v2396_v55 = vcombine.low %v221_v46, %v225_v47  ;;  %v2389_v58 = vcombine.high %v213_v52, %v217_v53  ;;  %v69_v4 = vld [vmem:[#allocation7 + $0x10] sm:$0xff] }
  0xa2   :  { %1778 = vmatpush2.bf16.msra.mxu0 %v2322_v62  ;;  %v205_v62 = vld [vmem:[#allocation7 + $0x450] sm:$0xff] }
  0xa3   :  { %1779 = vmatprep.subr.bf16.mxu0 %v2315_v0  ;;  %v2260_v0 = vcombine.low %v85_v50, %v89_v51  ;;  %v73_v5 = vld [vmem:[#allocation7 + $0x30] sm:$0xff] }
  0xa4   :  { %1821 = vmatpush2.bf16.msra.mxu1 %v2450_v63  ;;  %v209_v63 = vld [vmem:[#allocation7 + $0x470] sm:$0xff]  ;;  %v2245_v10 = vcombine.high %v69_v4, %v73_v5 }
  0xa5   :  { %1822 = vmatprep.subr.bf16.mxu1 %v2443_v1  ;;  %v2388_v1 = vcombine.low %v213_v52, %v217_v53  ;;  %v2381_v3 = vcombine.high %v205_v62, %v209_v63  ;;  %v189_v13 = vld [vmem:[#allocation7 + $0x3d0] sm:$0xff] }
  0xa6   :  { %1780 = vmatpush2.bf16.msra.mxu0 %v2314_v6  ;;  %v197_v6 = vld [vmem:[#allocation7 + $0x410] sm:$0xff] }
  0xa7   :  { %1781 = vmatprep.subr.bf16.mxu0 %v2307_v8  ;;  %v2252_v8 = vcombine.low %v77_v60, %v81_v61  ;;  %v193_v14 = vld [vmem:[#allocation7 + $0x3f0] sm:$0xff] }
  0xa8   :  { %1823 = vmatpush2.bf16.msra.mxu1 %v2442_v7  ;;  %v201_v7 = vld [vmem:[#allocation7 + $0x430] sm:$0xff]  ;;  %v2365_v20 = vcombine.high %v189_v13, %v193_v14 }
  0xa9   :  { %1824 = vmatprep.subr.bf16.mxu1 %v2435_v9  ;;  %v2380_v9 = vcombine.low %v205_v62, %v209_v63  ;;  %v2373_v11 = vcombine.high %v197_v6, %v201_v7  ;;  %v181_v22 = vld [vmem:[#allocation7 + $0x390] sm:$0xff] }
  0xaa   :  { %1782 = vmatpush2.bf16.msra.mxu0 %v2306_v16  ;;  %v317_v16 = vld [vmem:[#allocation7 + $0x7d0] sm:$0xff] }
  0xab   :  { %1837 = vmatprep.subr.bf16.mxu0 %v2301_v18  ;;  %v2244_v18 = vcombine.low %v69_v4, %v73_v5  ;;  %v185_v23 = vld [vmem:[#allocation7 + $0x3b0] sm:$0xff] }
  0xac   :  { %1825 = vmatpush2.bf16.msra.mxu1 %v2434_v17  ;;  %v321_v17 = vld [vmem:[#allocation7 + $0x7f0] sm:$0xff]  ;;  %v2357_v28 = vcombine.high %v181_v22, %v185_v23 }
  0xad   :  { %1880 = vmatprep.subr.bf16.mxu1 %v2429_v19  ;;  %1784 = vmatmul.mubr.bf16.vlgmr.msra.gmra.mxu0 %v2695_v12  ;;  %v2372_v19 = vcombine.low %v197_v6, %v201_v7  ;;  %v2493_v21 = vcombine.high %v317_v16, %v321_v17  ;;  %v173_v30 = vld [vmem:[#allocation7 + $0x350] sm:$0xff] }
  0xae   :  { %1838 = vmatpush1.bf16.msra.mxu0 %v2300_v24  ;;  %1869 = vmatprep.mubr.bf16.mxu0 %v2689_v56  ;;  %v2404_v56 = vcombine.low %v229_v38, %v233_v39  ;;  %v309_v24 = vld [vmem:[#allocation7 + $0x790] sm:$0xff] }
  0xaf   :  { %1827 = vmatmul.mubr.bf16.vlgmr.msra.gmra.mxu1 %v2697_v15  ;;  %1839 = vmatprep.subr.bf16.mxu0 %v2293_v26  ;;  %v2364_v26 = vcombine.low %v189_v13, %v193_v14  ;;  %v177_v31 = vld [vmem:[#allocation7 + $0x370] sm:$0xff] }
  0xb0   :  { %1881 = vmatpush1.bf16.msra.mxu1 %v2428_v25  ;;  %1912 = vmatprep.mubr.bf16.mxu1 %v2691_v59  ;;  %v2397_v59 = vcombine.high %v221_v46, %v225_v47  ;;  %v313_v25 = vld [vmem:[#allocation7 + $0x7b0] sm:$0xff]  ;;  %v2349_v36 = vcombine.high %v173_v30, %v177_v31 }
  0xb1   :  { %1882 = vmatprep.subr.bf16.mxu1 %v2421_v27  ;;  %v2492_v27 = vcombine.low %v317_v16, %v321_v17  ;;  %v2485_v29 = vcombine.high %v309_v24, %v313_v25  ;;  %v165_v38 = vld [vmem:[#allocation7 + $0x310] sm:$0xff]  ;;  %v126_v16 = vld [vmem:[#allocation7 + $0x1d8] sm:$0xff] }
  0xb2   :  { %1840 = vmatpush1.bf16.msra.mxu0 %v2292_v32  ;;  %v301_v32 = vld [vmem:[#allocation7 + $0x750] sm:$0xff]  ;;  %v130_v17 = vld [vmem:[#allocation7 + $0x1f8] sm:$0xff] }
  0xb3   :  { %1841 = vmatprep.subr.bf16.mxu0 %v2285_v34  ;;  %v2356_v34 = vcombine.low %v181_v22, %v185_v23  ;;  %v169_v39 = vld [vmem:[#allocation7 + $0x330] sm:$0xff]  ;;  %v2303_v22 = vcombine.high %v126_v16, %v130_v17 }
  0xb4   :  { %1883 = vmatpush1.bf16.msra.mxu1 %v2420_v33  ;;  %v305_v33 = vld [vmem:[#allocation7 + $0x770] sm:$0xff]  ;;  %v2341_v44 = vcombine.high %v165_v38, %v169_v39 }
  0xb5   :  { %1884 = vmatprep.subr.bf16.mxu1 %v2413_v35  ;;  %v2484_v35 = vcombine.low %v309_v24, %v313_v25  ;;  %v2477_v37 = vcombine.high %v301_v32, %v305_v33  ;;  %v157_v46 = vld [vmem:[#allocation7 + $0x2d0] sm:$0xff]  ;;  %v118_v24 = vld [vmem:[#allocation7 + $0x198] sm:$0xff] }
  0xb6   :  { %1842 = vmatpush1.bf16.msra.mxu0 %v2284_v40  ;;  %v293_v40 = vld [vmem:[#allocation7 + $0x710] sm:$0xff]  ;;  %v122_v25 = vld [vmem:[#allocation7 + $0x1b8] sm:$0xff] }
  0xb7   :  { %1843 = vmatprep.subr.bf16.mxu0 %v2277_v42  ;;  %v2348_v42 = vcombine.low %v173_v30, %v177_v31  ;;  %v161_v47 = vld [vmem:[#allocation7 + $0x2f0] sm:$0xff]  ;;  %v2295_v30 = vcombine.high %v118_v24, %v122_v25 }
  0xb8   :  { %1885 = vmatpush1.bf16.msra.mxu1 %v2412_v41  ;;  %v297_v41 = vld [vmem:[#allocation7 + $0x730] sm:$0xff]  ;;  %v2333_v50 = vcombine.high %v157_v46, %v161_v47 }
  0xb9   :  { %1886 = vmatprep.subr.bf16.mxu1 %v2405_v43  ;;  %v2476_v43 = vcombine.low %v301_v32, %v305_v33  ;;  %v2469_v45 = vcombine.high %v293_v40, %v297_v41  ;;  %v149_v52 = vld [vmem:[#allocation7 + $0x290] sm:$0xff]  ;;  %v110_v32 = vld [vmem:[#allocation7 + $0x158] sm:$0xff] }
  0xba   :  { %1844 = vmatpush1.bf16.msra.mxu0 %v2276_v48  ;;  %v285_v48 = vld [vmem:[#allocation7 + $0x6d0] sm:$0xff]  ;;  %v114_v33 = vld [vmem:[#allocation7 + $0x178] sm:$0xff] }
  0xbb   :  { %1845 = vmatprep.subr.bf16.mxu0 %v2269_v49  ;;  %v2340_v49 = vcombine.low %v165_v38, %v169_v39  ;;  %v153_v53 = vld [vmem:[#allocation7 + $0x2b0] sm:$0xff]  ;;  %v2287_v38 = vcombine.high %v110_v32, %v114_v33 }
  0xbc   :  { %1887 = vmatpush1.bf16.msra.mxu1 %v2404_v56  ;;  %v289_v56 = vld [vmem:[#allocation7 + $0x6f0] sm:$0xff]  ;;  %v2325_v60 = vcombine.high %v149_v52, %v153_v53 }
  0xbd   :  { %1888 = vmatprep.subr.bf16.mxu1 %v2397_v59  ;;  %v2468_v59 = vcombine.low %v293_v40, %v297_v41  ;;  %v2461_v51 = vcombine.high %v285_v48, %v289_v56  ;;  %v141_v62 = vld [vmem:[#allocation7 + $0x250] sm:$0xff]  ;;  %v102_v40 = vld [vmem:[#allocation7 + $0x118] sm:$0xff] }
  0xbe   :  { %1846 = vmatpush1.bf16.msra.mxu0 %v2268_v54  ;;  %v277_v54 = vld [vmem:[#allocation7 + $0x690] sm:$0xff]  ;;  %v106_v41 = vld [vmem:[#allocation7 + $0x138] sm:$0xff] }
  0xbf   :  { %1847 = vmatprep.subr.bf16.mxu0 %v2261_v57  ;;  %v2332_v57 = vcombine.low %v157_v46, %v161_v47  ;;  %v145_v63 = vld [vmem:[#allocation7 + $0x270] sm:$0xff]  ;;  %v2279_v46 = vcombine.high %v102_v40, %v106_v41 }
  0xc0   :  { %1889 = vmatpush1.bf16.msra.mxu1 %v2396_v55  ;;  %v281_v55 = vld [vmem:[#allocation7 + $0x6b0] sm:$0xff]  ;;  %v2317_v4 = vcombine.high %v141_v62, %v145_v63 }
  0xc1   :  { %1890 = vmatprep.subr.bf16.mxu1 %v2389_v58  ;;  %v2460_v58 = vcombine.low %v285_v48, %v289_v56  ;;  %v2453_v61 = vcombine.high %v277_v54, %v281_v55  ;;  %v133_v6 = vld [vmem:[#allocation7 + $0x210] sm:$0xff]  ;;  %v94_v48 = vld [vmem:[#allocation7 + $0xd8] sm:$0xff] }
  0xc2   :  { %1848 = vmatpush1.bf16.msra.mxu0 %v2260_v0  ;;  %v269_v0 = vld [vmem:[#allocation7 + $0x650] sm:$0xff]  ;;  %v98_v56 = vld [vmem:[#allocation7 + $0xf8] sm:$0xff] }
  0xc3   :  { %1849 = vmatprep.subr.bf16.mxu0 %v2253_v2  ;;  %v2324_v2 = vcombine.low %v149_v52, %v153_v53  ;;  %v137_v7 = vld [vmem:[#allocation7 + $0x230] sm:$0xff]  ;;  %v2271_v52 = vcombine.high %v94_v48, %v98_v56 }
  0xc4   :  { %1891 = vmatpush1.bf16.msra.mxu1 %v2388_v1  ;;  %v273_v1 = vld [vmem:[#allocation7 + $0x670] sm:$0xff]  ;;  %v2309_v13 = vcombine.high %v133_v6, %v137_v7 }
  0xc5   :  { %1892 = vmatprep.subr.bf16.mxu1 %v2381_v3  ;;  %v2452_v3 = vcombine.low %v277_v54, %v281_v55  ;;  %v2445_v5 = vcombine.high %v269_v0, %v273_v1  ;;  %v86_v54 = vld [vmem:[#allocation7 + $0x98] sm:$0xff] }
  0xc6   :  { %1850 = vmatpush1.bf16.msra.mxu0 %v2252_v8  ;;  %v261_v8 = vld [vmem:[#allocation7 + $0x610] sm:$0xff]  ;;  %v90_v55 = vld [vmem:[#allocation7 + $0xb8] sm:$0xff] }
  0xc7   :  { %1851 = vmatprep.subr.bf16.mxu0 %v2245_v10  ;;  %v2316_v10 = vcombine.low %v141_v62, %v145_v63  ;;  %v2263_v62 = vcombine.high %v86_v54, %v90_v55 }
  0xc8   :  { %1893 = vmatpush1.bf16.msra.mxu1 %v2380_v9  ;;  %v265_v9 = vld [vmem:[#allocation7 + $0x630] sm:$0xff] }
  0xc9   :  { %1894 = vmatprep.subr.bf16.mxu1 %v2373_v11  ;;  %v2444_v11 = vcombine.low %v269_v0, %v273_v1  ;;  %v2437_v14 = vcombine.high %v261_v8, %v265_v9  ;;  %v78_v0 = vld [vmem:[#allocation7 + $0x58] sm:$0xff] }
  0xca   :  { %1852 = vmatpush1.bf16.msra.mxu0 %v2244_v18  ;;  %v254_v18 = vld [vmem:[#allocation7 + $0x5d8] sm:$0xff] }
  0xcb   :  { %1853 = vmatprep.subr.bf16.mxu0 %v2365_v20  ;;  %v2308_v20 = vcombine.low %v133_v6, %v137_v7  ;;  %v82_v1 = vld [vmem:[#allocation7 + $0x78] sm:$0xff] }
  0xcc   :  { %1895 = vmatpush1.bf16.msra.mxu1 %v2372_v19  ;;  %v258_v19 = vld [vmem:[#allocation7 + $0x5f8] sm:$0xff]  ;;  %v2255_v6 = vcombine.high %v78_v0, %v82_v1 }
  0xcd   :  { %1896 = vmatprep.subr.bf16.mxu1 %v2493_v21  ;;  %v2436_v21 = vcombine.low %v261_v8, %v265_v9  ;;  %v2431_v23 = vcombine.high %v254_v18, %v258_v19  ;;  %v70_v8 = vld [vmem:[#allocation7 + $0x18] sm:$0xff] }
  0xce   :  { %1854 = vmatpush2.bf16.msra.mxu0 %v2364_v26  ;;  %v246_v26 = vld [vmem:[#allocation7 + $0x598] sm:$0xff] }
  0xcf   :  { %1855 = vmatprep.subr.bf16.mxu0 %v2357_v28  ;;  %v2302_v28 = vcombine.low %v126_v16, %v130_v17  ;;  %v74_v9 = vld [vmem:[#allocation7 + $0x38] sm:$0xff] }
  0xd0   :  { %1897 = vmatpush2.bf16.msra.mxu1 %v2492_v27  ;;  %v250_v27 = vld [vmem:[#allocation7 + $0x5b8] sm:$0xff]  ;;  %v2247_v16 = vcombine.high %v70_v8, %v74_v9 }
  0xd1   :  { %1898 = vmatprep.subr.bf16.mxu1 %v2485_v29  ;;  %v2430_v29 = vcombine.low %v254_v18, %v258_v19  ;;  %v2423_v31 = vcombine.high %v246_v26, %v250_v27  ;;  %v190_v18 = vld [vmem:[#allocation7 + $0x3d8] sm:$0xff] }
  0xd2   :  { %1856 = vmatpush2.bf16.msra.mxu0 %v2356_v34  ;;  %v238_v34 = vld [vmem:[#allocation7 + $0x558] sm:$0xff] }
  0xd3   :  { %1857 = vmatprep.subr.bf16.mxu0 %v2349_v36  ;;  %v2294_v36 = vcombine.low %v118_v24, %v122_v25  ;;  %v194_v19 = vld [vmem:[#allocation7 + $0x3f8] sm:$0xff] }
  0xd4   :  { %1899 = vmatpush2.bf16.msra.mxu1 %v2484_v35  ;;  %v242_v35 = vld [vmem:[#allocation7 + $0x578] sm:$0xff]  ;;  %v2367_v24 = vcombine.high %v190_v18, %v194_v19 }
  0xd5   :  { %1900 = vmatprep.subr.bf16.mxu1 %v2477_v37  ;;  %v2422_v37 = vcombine.low %v246_v26, %v250_v27  ;;  %v2415_v39 = vcombine.high %v238_v34, %v242_v35  ;;  %v182_v26 = vld [vmem:[#allocation7 + $0x398] sm:$0xff] }
  0xd6   :  { %1858 = vmatpush2.bf16.msra.mxu0 %v2348_v42  ;;  %v2557_v42 = vld [vmem:[#allocation4 + $0x4] ss:$16 sps:$4 sm:$0xff]   ;;  %v186_v27 = vld [vmem:[#allocation7 + $0x3b8] sm:$0xff] }
  0xd7   :  { %1859 = vmatprep.subr.bf16.mxu0 %v2341_v44  ;;  %v234_v44 = vld [vmem:[#allocation7 + $0x538] sm:$0xff] }
  0xd8   :  { %1901 = vmatpush2.bf16.msra.mxu1 %v2476_v43  ;;  %v230_v43 = vld [vmem:[#allocation7 + $0x518] sm:$0xff] }
  0xd9   :  { %1902 = vmatprep.subr.bf16.mxu1 %v2469_v45  ;;  %v2558_v45 = vld [vmem:[#allocation4 + $0xc] ss:$16 sps:$4 sm:$0xff]   ;;  %v2407_v47 = vcombine.high %v230_v43, %v234_v44 }
  0xda   :  { %1860 = vmatpush2.bf16.msra.mxu0 %v2340_v49  ;;  %v222_v49 = vld [vmem:[#allocation7 + $0x4d8] sm:$0xff] }
  0xdb   :  { %1861 = vmatprep.subr.bf16.mxu0 %v2333_v50  ;;  %v2278_v50 = vcombine.low %v102_v40, %v106_v41 }
  0xdc   :  { %1903 = vmatpush2.bf16.msra.mxu1 %v2468_v59  ;;  %v226_v59 = vld [vmem:[#allocation7 + $0x4f8] sm:$0xff] }
  0xdd   :  { %1904 = vmatprep.subr.bf16.mxu1 %v2461_v51  ;;  %v2406_v51 = vcombine.low %v230_v43, %v234_v44  ;;  %v2399_v53 = vcombine.high %v222_v49, %v226_v59  ;;  %v170_v43 = vld [vmem:[#allocation7 + $0x338] sm:$0xff] }
  0xde   :  { %1862 = vmatpush2.bf16.msra.mxu0 %v2332_v57  ;;  %v214_v57 = vld [vmem:[#allocation7 + $0x498] sm:$0xff] }
  0xdf   :  { %1863 = vmatprep.subr.bf16.mxu0 %v2325_v60  ;;  %v2270_v60 = vcombine.low %v94_v48, %v98_v56  ;;  %v294_v44 = vld [vmem:[#allocation7 + $0x718] sm:$0xff] }
  0xe0   :  { %1905 = vmatpush2.bf16.msra.mxu1 %v2460_v58  ;;  %v218_v58 = vld [vmem:[#allocation7 + $0x4b8] sm:$0xff] }
  0xe1   :  { %1906 = vmatprep.subr.bf16.mxu1 %v2453_v61  ;;  %v2398_v61 = vcombine.low %v222_v49, %v226_v59  ;;  %v2391_v63 = vcombine.high %v214_v57, %v218_v58  ;;  %v158_v48 = vld [vmem:[#allocation7 + $0x2d8] sm:$0xff] }
  0xe2   :  { %1864 = vmatpush2.bf16.msra.mxu0 %v2324_v2  ;;  %v206_v2 = vld [vmem:[#allocation7 + $0x458] sm:$0xff] }
  0xe3   :  { %1865 = vmatprep.subr.bf16.mxu0 %v2317_v4  ;;  %v2262_v4 = vcombine.low %v86_v54, %v90_v55  ;;  %v162_v56 = vld [vmem:[#allocation7 + $0x2f8] sm:$0xff] }
  0xe4   :  { %1907 = vmatpush2.bf16.msra.mxu1 %v2452_v3  ;;  %v210_v3 = vld [vmem:[#allocation7 + $0x478] sm:$0xff] }
  0xe5   :  { %1908 = vmatprep.subr.bf16.mxu1 %v2445_v5  ;;  %v2390_v5 = vcombine.low %v214_v57, %v218_v58  ;;  %v2383_v7 = vcombine.high %v206_v2, %v210_v3  ;;  %v286_v49 = vld [vmem:[#allocation7 + $0x6d8] sm:$0xff] }
  0xe6   :  { %1866 = vmatpush2.bf16.msra.mxu0 %v2316_v10  ;;  %v198_v10 = vld [vmem:[#allocation7 + $0x418] sm:$0xff] }
  0xe7   :  { %1867 = vmatprep.subr.bf16.mxu0 %v2309_v13  ;;  %v2254_v13 = vcombine.low %v78_v0, %v82_v1  ;;  %v290_v59 = vld [vmem:[#allocation7 + $0x6f8] sm:$0xff] }
  0xe8   :  { %1909 = vmatpush2.bf16.msra.mxu1 %v2444_v11  ;;  %v202_v11 = vld [vmem:[#allocation7 + $0x438] sm:$0xff] }
  0xe9   :  { %1910 = vmatprep.subr.bf16.mxu1 %v2437_v14  ;;  %v2382_v14 = vcombine.low %v206_v2, %v210_v3  ;;  %v2375_v17 = vcombine.high %v198_v10, %v202_v11  ;;  %v150_v54 = vld [vmem:[#allocation7 + $0x298] sm:$0xff] }
  0xea   :  { %1868 = vmatpush2.bf16.msra.mxu0 %v2308_v20  ;;  %v318_v20 = vld [vmem:[#allocation7 + $0x7d8] sm:$0xff] }
  0xeb   :  { %1923 = vmatprep.subr.bf16.mxu0 %v2303_v22  ;;  %v2246_v22 = vcombine.low %v70_v8, %v74_v9  ;;  %v154_v55 = vld [vmem:[#allocation7 + $0x2b8] sm:$0xff] }
  0xec   :  { %1911 = vmatpush2.bf16.msra.mxu1 %v2436_v21  ;;  %v322_v21 = vld [vmem:[#allocation7 + $0x7f8] sm:$0xff] }
  0xed   :  { %1966 = vmatprep.subr.bf16.mxu1 %v2431_v23  ;;  %1870 = vmatmul.mubr.bf16.vlgmr.msra.gmra.mxu0 %v2695_v12  ;;  %v2286_v12 = vcombine.low %v110_v32, %v114_v33  ;;  %v2374_v23 = vcombine.low %v198_v10, %v202_v11  ;;  %v2495_v25 = vcombine.high %v318_v20, %v322_v21  ;;  %v278_v57 = vld [vmem:[#allocation7 + $0x698] sm:$0xff] }
  0xee   :  { %1924 = vmatpush1.bf16.msra.mxu0 %v2302_v28  ;;  %1955 = vmatprep.mubr.bf16.mxu0 %v2557_v42  ;;  %v310_v28 = vld [vmem:[#allocation7 + $0x798] sm:$0xff]  ;;  %v2359_v32 = vcombine.high %v182_v26, %v186_v27 }
  0xef   :  { %1913 = vmatmul.mubr.bf16.vlgmr.msra.gmra.mxu1 %v2697_v15  ;;  %1925 = vmatprep.subr.bf16.mxu0 %v2295_v30  ;;  %v2414_v15 = vcombine.low %v238_v34, %v242_v35  ;;  %v2366_v30 = vcombine.low %v190_v18, %v194_v19  ;;  %v174_v34 = vld [vmem:[#allocation7 + $0x358] sm:$0xff] }
  0xf0   :  { %1967 = vmatpush1.bf16.msra.mxu1 %v2430_v29  ;;  %1998 = vmatprep.mubr.bf16.mxu1 %v2558_v45  ;;  %v314_v29 = vld [vmem:[#allocation7 + $0x7b8] sm:$0xff] }
  0xf1   :  { %1968 = vmatprep.subr.bf16.mxu1 %v2423_v31  ;;  %v2494_v31 = vcombine.low %v318_v20, %v322_v21  ;;  %v2487_v33 = vcombine.high %v310_v28, %v314_v29  ;;  %v178_v35 = vld [vmem:[#allocation7 + $0x378] sm:$0xff]  ;;  %v2559_v20 = vld [vmem:[#allocation4] ss:$16 sps:$4 sm:$0xff]  }
  0xf2   :  { %1926 = vmatpush1.bf16.msra.mxu0 %v2294_v36  ;;  %v302_v36 = vld [vmem:[#allocation7 + $0x758] sm:$0xff]  ;;  %v2351_v40 = vcombine.high %v174_v34, %v178_v35 }
  0xf3   :  { %1927 = vmatprep.subr.bf16.mxu0 %v2287_v38  ;;  %v2358_v38 = vcombine.low %v182_v26, %v186_v27  ;;  %v166_v42 = vld [vmem:[#allocation7 + $0x318] sm:$0xff] }
  0xf4   :  { %1969 = vmatpush1.bf16.msra.mxu1 %v2422_v37  ;;  %v306_v37 = vld [vmem:[#allocation7 + $0x778] sm:$0xff] }
  0xf5   :  { %1970 = vmatprep.subr.bf16.mxu1 %v2415_v39  ;;  %v2486_v39 = vcombine.low %v310_v28, %v314_v29  ;;  %v2479_v41 = vcombine.high %v302_v36, %v306_v37  ;;  %v298_v45 = vld [vmem:[#allocation7 + $0x738] sm:$0xff] }
  0xf6   :  { %1928 = vmatpush1.bf16.msra.mxu0 %v2286_v12  ;;  %v2350_v12 = vcombine.low %v174_v34, %v178_v35  ;;  %v282_v58 = vld [vmem:[#allocation7 + $0x6b8] sm:$0xff]  ;;  %v325_v35 = vlaneseq }
  0xf7   :  { %1929 = vmatprep.subr.bf16.mxu0 %v2279_v46  ;;  %v2343_v46 = vcombine.high %v166_v42, %v170_v43  ;;  %v142_v0 = vld [vmem:[#allocation7 + $0x258] sm:$0xff] }
  0xf8   :  { %1971 = vmatpush1.bf16.msra.mxu1 %v2414_v15  ;;  %v2478_v15 = vcombine.low %v302_v36, %v306_v37  ;;  %v146_v1 = vld [vmem:[#allocation7 + $0x278] sm:$0xff] }
  0xf9   :  { %1972 = vmatprep.subr.bf16.mxu1 %v2407_v47  ;;  %v2471_v47 = vcombine.high %v294_v44, %v298_v45  ;;  %v270_v2 = vld [vmem:[#allocation7 + $0x658] sm:$0xff] }
  0xfa   :  { %1930 = vmatpush1.bf16.msra.mxu0 %v2278_v50  ;;  %v2342_v50 = vcombine.low %v166_v42, %v170_v43  ;;  %v274_v3 = vld [vmem:[#allocation7 + $0x678] sm:$0xff] }
  0xfb   :  { %1931 = vmatprep.subr.bf16.mxu0 %v2271_v52  ;;  %v2335_v52 = vcombine.high %v158_v48, %v162_v56  ;;  %v134_v8 = vld [vmem:[#allocation7 + $0x218] sm:$0xff] }
  0xfc   :  { %1973 = vmatpush1.bf16.msra.mxu1 %v2406_v51  ;;  %v2470_v51 = vcombine.low %v294_v44, %v298_v45  ;;  %v138_v9 = vld [vmem:[#allocation7 + $0x238] sm:$0xff] }
  0xfd   :  { %1974 = vmatprep.subr.bf16.mxu1 %v2399_v53  ;;  %v2463_v53 = vcombine.high %v286_v49, %v290_v59  ;;  %v262_v10 = vld [vmem:[#allocation7 + $0x618] sm:$0xff]  ;;  %v2310_v18 = vcombine.low %v134_v8, %v138_v9 }
  0xfe   :  { %1932 = vmatpush1.bf16.msra.mxu0 %v2270_v60  ;;  %v2334_v60 = vcombine.low %v158_v48, %v162_v56  ;;  %v266_v11 = vld [vmem:[#allocation7 + $0x638] sm:$0xff] }
  0xff   :  { %1933 = vmatprep.subr.bf16.mxu0 %v2263_v62  ;;  %v2327_v62 = vcombine.high %v150_v54, %v154_v55  ;;  %v2438_v19 = vcombine.low %v262_v10, %v266_v11  ;;  %v2560_v21 = vld [vmem:[#allocation4 + $0x8] ss:$16 sps:$4 sm:$0xff]  }
 0x100   :  { %1975 = vmatpush1.bf16.msra.mxu1 %v2398_v61  ;;  %v2462_v61 = vcombine.low %v286_v49, %v290_v59 }
 0x101   :  { %1976 = vmatprep.subr.bf16.mxu1 %v2391_v63  ;;  %v2455_v63 = vcombine.high %v278_v57, %v282_v58 }
 0x102   :  { %1934 = vmatpush1.bf16.msra.mxu0 %v2262_v4  ;;  %v2326_v4 = vcombine.low %v150_v54, %v154_v55 }
 0x103   :  { %1935 = vmatprep.subr.bf16.mxu0 %v2255_v6  ;;  %v2319_v6 = vcombine.high %v142_v0, %v146_v1 }
 0x104   :  { %1977 = vmatpush1.bf16.msra.mxu1 %v2390_v5  ;;  %v2454_v5 = vcombine.low %v278_v57, %v282_v58 }
 0x105   :  { %1978 = vmatprep.subr.bf16.mxu1 %v2383_v7  ;;  %v2447_v7 = vcombine.high %v270_v2, %v274_v3 }
 0x106   :  { %1936 = vmatpush1.bf16.msra.mxu0 %v2254_v13  ;;  %v2318_v13 = vcombine.low %v142_v0, %v146_v1 }
 0x107   :  { %1937 = vmatprep.subr.bf16.mxu0 %v2247_v16  ;;  %v2311_v16 = vcombine.high %v134_v8, %v138_v9 }
 0x108   :  { %1979 = vmatpush1.bf16.msra.mxu1 %v2382_v14  ;;  %v2446_v14 = vcombine.low %v270_v2, %v274_v3 }
 0x109   :  { %1980 = vmatprep.subr.bf16.mxu1 %v2375_v17  ;;  %v2439_v17 = vcombine.high %v262_v10, %v266_v11 }
 0x10a   :  { %1938 = vmatpush1.bf16.msra.mxu0 %v2246_v22  ;;  %v2654_v22 = vmov -inf  }
 0x10b   :  { %1939 = vmatprep.subr.bf16.mxu0 %v2367_v24  ;;  %59 = vst.msk [vmem:[#allocation2] sm:$0xff] %vm58_vm0, %v2654_v22  ;;  %60 = vst.msk [vmem:[#allocation2 + $0x8] sm:$0xff] %vm58_vm0, %v2654_v22 }
 0x10c   :  { %1981 = vmatpush1.bf16.msra.mxu1 %v2374_v23 }
 0x10d   :  { %1982 = vmatprep.subr.bf16.mxu1 %v2495_v25 }
 0x10e   :  { %1940 = vmatpush2.bf16.msra.mxu0 %v2366_v30 }
 0x10f   :  { %1941 = vmatprep.subr.bf16.mxu0 %v2359_v32 }
 0x110   :  { %1983 = vmatpush2.bf16.msra.mxu1 %v2494_v31 }
 0x111   :  { %1984 = vmatprep.subr.bf16.mxu1 %v2487_v33 }
 0x112   :  { %1942 = vmatpush2.bf16.msra.mxu0 %v2358_v38  ;;  %v326_v38 = vshrl.u32 %v325_v35, 7 }
 0x113   :  { %1943 = vmatprep.subr.bf16.mxu0 %v2351_v40 }
 0x114   :  { %1985 = vmatpush2.bf16.msra.mxu1 %v2486_v39  ;;  %v327_v43 = vsub.s32 0, %v326_v38  ;;  %v339_v44 = vsub.s32 3, %v326_v38  ;;  %v351_v54 = vsub.s32 6, %v326_v38 }
 0x115   :  { %1986 = vmatprep.subr.bf16.mxu1 %v2479_v41  ;;  %v335_v41 = vsub.s32 2, %v326_v38 }
 0x116   :  { %1944 = vmatpush2.bf16.msra.mxu0 %v2350_v12  ;;  %v323_v12 = vld [vmem:[#allocation9] sm:$0xff] }
 0x117   :  { %1945 = vmatprep.subr.bf16.mxu0 %v2343_v46  ;;  %v331_v46 = vsub.s32 1, %v326_v38  ;;  %v336_v48 = vrot.slane %v323_v12, %v335_v41  ;;  %v328_v49 = vrot.slane %v323_v12, %v327_v43  ;;  %v340_v59 = vrot.slane %v323_v12, %v339_v44 }
 0x118   :  { %1987 = vmatpush2.bf16.msra.mxu1 %v2478_v15  ;;  %v343_v15 = vsub.s32 4, %v326_v38  ;;  %v352_v2 = vrot.slane %v323_v12, %v351_v54  ;;  %v2767_v54 = vld [vmem:[#allocation2] sm:$0xff] }
 0x119   :  { %1988 = vmatprep.subr.bf16.mxu1 %v2471_v47  ;;  %v347_v47 = vsub.s32 5, %v326_v38 }
 0x11a   :  { %1946 = vmatpush2.bf16.msra.mxu0 %v2342_v50 }
 0x11b   :  { %1947 = vmatprep.subr.bf16.mxu0 %v2335_v52  ;;  %v332_v52 = vrot.slane %v323_v12, %v331_v46 }
 0x11c   :  { %1989 = vmatpush2.bf16.msra.mxu1 %v2470_v51  ;;  %v344_v51 = vrot.slane %v323_v12, %v343_v15 }
 0x11d   :  { %1990 = vmatprep.subr.bf16.mxu1 %v2463_v53  ;;  %v348_v53 = vrot.slane %v323_v12, %v347_v47 }
 0x11e   :  { %1948 = vmatpush2.bf16.msra.mxu0 %v2334_v60 }
 0x11f   :  { %1949 = vmatprep.subr.bf16.mxu0 %v2327_v62  ;;  %v355_v62 = vsub.s32 7, %v326_v38 }
 0x120   :  { %1991 = vmatpush2.bf16.msra.mxu1 %v2462_v61 }
 0x121   :  { %1992 = vmatprep.subr.bf16.mxu1 %v2455_v63  ;;  %v356_v10 = vrot.slane %v323_v12, %v355_v62 }
 0x122   :  { %1950 = vmatpush2.bf16.msra.mxu0 %v2326_v4 }
 0x123   :  { %1951 = vmatprep.subr.bf16.mxu0 %v2319_v6 }
 0x124   :  { %1993 = vmatpush2.bf16.msra.mxu1 %v2454_v5 }
 0x125   :  { %1994 = vmatprep.subr.bf16.mxu1 %v2447_v7 }
 0x126   :  { %1952 = vmatpush2.bf16.msra.mxu0 %v2318_v13 }
 0x127   :  { %1953 = vmatprep.subr.bf16.mxu0 %v2311_v16 }
 0x128   :  { %1995 = vmatpush2.bf16.msra.mxu1 %v2446_v14 }
 0x129   :  { %1996 = vmatprep.subr.bf16.mxu1 %v2439_v17 }
 0x12a   :  { %1954 = vmatpush2.bf16.msra.mxu0 %v2310_v18 }
 0x12c   :  { %1997 = vmatpush2.bf16.msra.mxu1 %v2438_v19 }
 0x12d   :  { %1956 = vmatmul.mubr.bf16.vlgmr.msra.gmra.mxu0 %v2559_v20  ;;  %v1699_v23 = vpop.f32.mrf.mxu0 }
 0x12e   :  { %v1700_v58 = vadd.f32 %v1699_v23, %v328_v49 }
 0x12f   :  { %1999 = vmatmul.mubr.bf16.vlgmr.msra.gmra.mxu1 %v2560_v21  ;;  %v1742_v24 = vpop.f32.mrf.mxu1  ;;  %v1701_v25 = vpop.f32.mrf.mxu0 }
 0x130   :  { %v1702_v0 = vadd.f32 %v1701_v25, %v332_v52  ;;  %v2717_v7 = vadd.f32 %v1742_v24, %v1700_v58  ;;  %v2772_v58 = vld [vmem:[#allocation2 + $0x8] sm:$0xff] }
 0x131   :  { %v1744_v26 = vpop.f32.mrf.mxu1  ;;  %v1703_v27 = vpop.f32.mrf.mxu0 }
 0x132   :  { %v1704_v11 = vadd.f32 %v1703_v27, %v328_v49  ;;  %v2723_v18 = vadd.f32 %v1744_v26, %v1702_v0 }
 0x133   :  { %v2711_v28 = vpop.f32.mrf.mxu1  ;;  %v1705_v29 = vpop.f32.mrf.mxu0 }
 0x134   :  { %v1706_v13 = vadd.f32 %v1705_v29, %v332_v52  ;;  %v2655_v52 = vmov 0  }
 0x135   :  { %v2713_v30 = vpop.f32.mrf.mxu1  ;;  %2509 = vset.pattern.permute.xlu1 %v2655_v52  ;;  %2510 = vset.pattern.permute.xlu0 %v2655_v52 }
 0x16d   :  { %v1785_v31 = vpop.f32.mrf.mxu0 }
 0x16e   :  { %v1786_v55 = vadd.f32 %v1785_v31, %v336_v48 }
 0x16f   :  { %v1828_v32 = vpop.f32.mrf.mxu1  ;;  %v1787_v33 = vpop.f32.mrf.mxu0 }
 0x170   :  { %v1788_v60 = vadd.f32 %v1787_v33, %v340_v59  ;;  %v2715_v3 = vadd.f32 %v1828_v32, %v1786_v55  ;;  %v2738_v33 = vadd.f32 %v2711_v28, %v1704_v11 }
 0x171   :  { %v1830_v34 = vpop.f32.mrf.mxu1  ;;  %v1789_v36 = vpop.f32.mrf.mxu0 }
 0x172   :  { %v1790_v4 = vadd.f32 %v1789_v36, %v336_v48  ;;  %v2719_v8 = vadd.f32 %v1830_v34, %v1788_v60  ;;  %v2011_v23 = vmax.f32 %v2717_v7, %v2715_v3  ;;  %v2741_v34 = vadd.f32 %v2713_v30, %v1706_v13 }
 0x173   :  { %v1832_v37 = vpop.f32.mrf.mxu1  ;;  %v1791_v39 = vpop.f32.mrf.mxu0 }
 0x174   :  { %v1792_v5 = vadd.f32 %v1791_v39, %v340_v59  ;;  %v2729_v24 = vadd.f32 %v1832_v37, %v1790_v4  ;;  %v2012_v29 = vmax.f32 %v2723_v18, %v2719_v8 }
 0x175   :  { %v1834_v40 = vpop.f32.mrf.mxu1 }
 0x176   :  { %v2731_v25 = vadd.f32 %v1834_v40, %v1792_v5  ;;  %v2020_v28 = vmax.f32 %v2738_v33, %v2729_v24 }
 0x178   :  { %v2021_v30 = vmax.f32 %v2741_v34, %v2731_v25 }
 0x1ad   :  { %v1871_v42 = vpop.f32.mrf.mxu0 }
 0x1ae   :  { %v1872_v63 = vadd.f32 %v1871_v42, %v344_v51 }
 0x1af   :  { %v1914_v45 = vpop.f32.mrf.mxu1  ;;  %v1873_v56 = vpop.f32.mrf.mxu0 }
 0x1b0   :  { %v1874_v1 = vadd.f32 %v1873_v56, %v348_v53  ;;  %v2721_v14 = vadd.f32 %v1914_v45, %v1872_v63 }
 0x1b1   :  { %v1916_v50 = vpop.f32.mrf.mxu1  ;;  %v1875_v57 = vpop.f32.mrf.mxu0 }
 0x1b2   :  { %v1876_v16 = vadd.f32 %v1875_v57, %v344_v51  ;;  %v2725_v19 = vadd.f32 %v1916_v50, %v1874_v1  ;;  %v2013_v37 = vmax.f32 %v2011_v23, %v2721_v14 }
 0x1b3   :  { %v1918_v61 = vpop.f32.mrf.mxu1  ;;  %v1877_v6 = vpop.f32.mrf.mxu0 }
 0x1b4   :  { %v1878_v20 = vadd.f32 %v1877_v6, %v348_v53  ;;  %v2743_v35 = vadd.f32 %v1918_v61, %v1876_v16  ;;  %v2014_v42 = vmax.f32 %v2012_v29, %v2725_v19  ;;  %v2656_v53 = vmov 0.0  }
 0x1b5   :  { %v1920_v9 = vpop.f32.mrf.mxu1  ;;  %61 = vst.msk [vmem:[#allocation3] sm:$0xff] %vm58_vm0, %v2656_v53  ;;  %62 = vst.msk [vmem:[#allocation3 + $0x8] sm:$0xff] %vm58_vm0, %v2656_v53 }
 0x1b6   :  { %v2746_v38 = vadd.f32 %v1920_v9, %v1878_v20  ;;  %v2022_v47 = vmax.f32 %v2020_v28, %v2743_v35 }
 0x1b8   :  { %v2023_v48 = vmax.f32 %v2021_v30, %v2746_v38 }
 0x1ed   :  { %v1957_v17 = vpop.f32.mrf.mxu0 }
 0x1ee   :  { %v1958_v21 = vadd.f32 %v1957_v17, %v352_v2 }
 0x1ef   :  { %v2000_v22 = vpop.f32.mrf.mxu1  ;;  %v1959_v27 = vpop.f32.mrf.mxu0 }
 0x1f0   :  { %v2735_v31 = vadd.f32 %v2000_v22, %v1958_v21  ;;  %v1960_v26 = vadd.f32 %v1959_v27, %v356_v10 }
 0x1f1   :  { %v2002_v32 = vpop.f32.mrf.mxu1  ;;  %v1961_v36 = vpop.f32.mrf.mxu0 }
 0x1f2   :  { %v2748_v39 = vadd.f32 %v2002_v32, %v1960_v26  ;;  %v1962_v40 = vadd.f32 %v1961_v36, %v352_v2  ;;  %v2015_v12 = vmax.f32 %v2013_v37, %v2735_v31 }
 0x1f3   :  { %v2004_v41 = vpop.f32.mrf.mxu1  ;;  %v1963_v43 = vpop.f32.mrf.mxu0 }
 0x1f4   :  { %v2755_v44 = vadd.f32 %v2004_v41, %v1962_v40  ;;  %v1964_v45 = vadd.f32 %v1963_v43, %v356_v10  ;;  %v2016_v15 = vmax.f32 %v2014_v42, %v2748_v39 }
 0x1f5   :  { %v2006_v46 = vpop.f32.mrf.mxu1 }
 0x1f6   :  { %v2761_v56 = vadd.f32 %v2006_v46, %v1964_v45  ;;  %v2017_v49 = vmax.f32 %v2015_v12, %v2016_v15  ;;  %v2024_v59 = vmax.f32 %v2022_v47, %v2755_v44 }
 0x1f8   :  { %2018 = vmax.xlane.f32.xlu0 %v2017_v49  ;;  %v2025_v50 = vmax.f32 %v2023_v48, %v2761_v56 }
 0x1fa   :  { %v2026_v51 = vmax.f32 %v2024_v59, %v2025_v50 }
 0x1fc   :  { %2027 = vmax.xlane.f32.xlu0 %v2026_v51 }
 0x281   :  { %v2019_v55 = vpop.xlane.xlu0 %2018 }
 0x282   :  { %v2770_v57 = vmax.f32 %v2767_v54, %v2019_v55 }
 0x284   :  { %v2031_v60 = vsub.f32 %v2767_v54, %v2770_v57  ;;  %2122 = vst.msk [vmem:[#allocation2] sm:$0xff] %vm58_vm0, %v2770_v57  ;;  %2043 = vperm.xlu1 %2509, %v2770_v57  }
 0x285   :  { %v2028_v61 = vpop.xlane.xlu0 %2027 }
 0x286   :  { %v2780_v62 = vmax.f32 %v2772_v58, %v2028_v61 }
 0x288   :  { %v2032_v63 = vsub.f32 %v2772_v58, %v2780_v62  ;;  %2123 = vst.msk [vmem:[#allocation2 + $0x8] sm:$0xff] %vm58_vm0, %v2780_v62  ;;  %2048 = vperm.xlu1 %2509, %v2780_v62  }
 0x28b   :  { %v2148_v62 = vld [vmem:[#allocation2] sm:$0xff] }
 0x2ff   :  { %v2044_v0 = vpop.permute.xlu1 %2043 }
 0x300   :  { %v2051_v1 = vsub.f32 %v2717_v7, %v2044_v0  ;;  %v2052_v2 = vsub.f32 %v2723_v18, %v2044_v0  ;;  %v2053_v4 = vsub.f32 %v2715_v3, %v2044_v0  ;;  %v2054_v5 = vsub.f32 %v2719_v8, %v2044_v0 }
 0x301   :  { %v2055_v10 = vsub.f32 %v2721_v14, %v2044_v0  ;;  %v2056_v23 = vsub.f32 %v2725_v19, %v2044_v0  ;;  %v2057_v37 = vsub.f32 %v2735_v31, %v2044_v0  ;;  %v2058_v41 = vsub.f32 %v2748_v39, %v2044_v0 }
 0x302   :  { %v2067_v6 = vmul.f32 1.442695, %v2051_v1  ;;  %v2069_v9 = vmul.f32 1.442695, %v2052_v2  ;;  %v2071_v11 = vmul.f32 1.442695, %v2053_v4 }
 0x303   :  { %v2073_v13 = vmul.f32 1.442695, %v2054_v5  ;;  %v2049_v16 = vpop.permute.xlu1 %2048  ;;  %v2075_v26 = vmul.f32 1.442695, %v2055_v10  ;;  %v2077_v28 = vmul.f32 1.442695, %v2056_v23 }
 0x304   :  { %2517 = vpow2.f32 %v2067_v6  ;;  %v2059_v17 = vsub.f32 %v2738_v33, %v2049_v16  ;;  %v2060_v20 = vsub.f32 %v2741_v34, %v2049_v16  ;;  %v2061_v21 = vsub.f32 %v2729_v24, %v2049_v16 }
 0x305   :  { %2519 = vpow2.f32 %v2069_v9  ;;  %v2062_v22 = vsub.f32 %v2731_v25, %v2049_v16  ;;  %v2063_v32 = vsub.f32 %v2743_v35, %v2049_v16  ;;  %v2064_v42 = vsub.f32 %v2746_v38, %v2049_v16 }
 0x306   :  { %v2083_v27 = vmul.f32 1.442695, %v2059_v17  ;;  %v2085_v29 = vmul.f32 1.442695, %v2060_v20  ;;  %2521 = vpow2.f32 %v2071_v11  ;;  %v2087_v36 = vmul.f32 1.442695, %v2061_v21 }
 0x307   :  { %2523 = vpow2.f32 %v2073_v13  ;;  %v2089_v40 = vmul.f32 1.442695, %v2062_v22  ;;  %v2091_v30 = vmul.f32 1.442695, %v2063_v32  ;;  %v2079_v43 = vmul.f32 1.442695, %v2057_v37 }
 0x308   :  { %2525 = vpow2.f32 %v2083_v27  ;;  %v2065_v45 = vsub.f32 %v2755_v44, %v2049_v16  ;;  %v2081_v12 = vmul.f32 1.442695, %v2058_v41  ;;  %v2066_v15 = vsub.f32 %v2761_v56, %v2049_v16 }
 0x309   :  { %2527 = vpow2.f32 %v2085_v29  ;;  %v2093_v46 = vmul.f32 1.442695, %v2064_v42  ;;  %v2035_v41 = vmul.f32 1.442695, %v2032_v63 }
 0x30a   :  { %2529 = vpow2.f32 %v2075_v26  ;;  %v2095_v47 = vmul.f32 1.442695, %v2065_v45  ;;  %v2097_v59 = vmul.f32 1.442695, %v2066_v15 }
 0x30b   :  { %2531 = vpow2.f32 %v2087_v36 }
 0x30c   :  { %2533 = vpow2.f32 %v2089_v40  ;;  %v2033_v40 = vmul.f32 1.442695, %v2031_v60 }
 0x30d   :  { %2535 = vpow2.f32 %v2077_v28  ;;  %v2037_v28 = vld [vmem:[#allocation3] sm:$0xff] }
 0x30e   :  { %2537 = vpow2.f32 %v2091_v30 }
 0x30f   :  { %2539 = vpow2.f32 %v2079_v43 }
 0x310   :  { %2541 = vpow2.f32 %v2081_v12  ;;  %v2038_v12 = vld [vmem:[#allocation3 + $0x8] sm:$0xff] }
 0x311   :  { %v2518_v48 = vpop.eup %2517  ;;  %2543 = vpow2.f32 %v2093_v46 }
 0x312   :  { %v2520_v49 = vpop.eup %2519  ;;  %2545 = vpow2.f32 %v2095_v47 }
 0x313   :  { %v2099_v50 = vadd.f32 %v2520_v49, %v2518_v48  ;;  %v2522_v51 = vpop.eup %2521  ;;  %2547 = vpow2.f32 %v2097_v59 }
 0x314   :  { %v2524_v52 = vpop.eup %2523  ;;  %2549 = vpow2.f32 %v2033_v40 }
 0x315   :  { %v2100_v53 = vadd.f32 %v2522_v51, %v2099_v50  ;;  %v2526_v55 = vpop.eup %2525  ;;  %2551 = vpow2.f32 %v2035_v41  ;;  %v2149_v50 = vld [vmem:[#allocation2 + $0x8] sm:$0xff] }
 0x316   :  { %v2528_v61 = vpop.eup %2527 }
 0x317   :  { %v2101_v0 = vadd.f32 %v2524_v52, %v2100_v53  ;;  %v2530_v1 = vpop.eup %2529  ;;  %v2108_v2 = vadd.f32 %v2528_v61, %v2526_v55 }
 0x318   :  { %v2532_v4 = vpop.eup %2531 }
 0x319   :  { %v2102_v5 = vadd.f32 %v2530_v1, %v2101_v0  ;;  %v2534_v6 = vpop.eup %2533  ;;  %v2109_v9 = vadd.f32 %v2532_v4, %v2108_v2 }
 0x31a   :  { %v2536_v10 = vpop.eup %2535 }
 0x31b   :  { %v2538_v11 = vpop.eup %2537  ;;  %v2103_v13 = vadd.f32 %v2536_v10, %v2102_v5  ;;  %v2110_v16 = vadd.f32 %v2534_v6, %v2109_v9 }
 0x31c   :  { %v2540_v17 = vpop.eup %2539 }
 0x31d   :  { %v2542_v20 = vpop.eup %2541  ;;  %v2104_v21 = vadd.f32 %v2540_v17, %v2103_v13  ;;  %v2111_v22 = vadd.f32 %v2538_v11, %v2110_v16 }
 0x31e   :  { %v2544_v23 = vpop.eup %2543 }
 0x31f   :  { %v2105_v27 = vadd.f32 %v2542_v20, %v2104_v21  ;;  %v2112_v29 = vadd.f32 %v2544_v23, %v2111_v22  ;;  %v2546_v26 = vpop.eup %2545 }
 0x320   :  { %v2548_v36 = vpop.eup %2547 }
 0x321   :  { %2106 = vadd.xlane.f32.xlu0 %v2105_v27  ;;  %v2113_v32 = vadd.f32 %v2546_v26, %v2112_v29  ;;  %v2550_v42 = vpop.eup %2549 }
 0x322   :  { %v2039_v30 = vmul.f32 %v2550_v42, %v2037_v28  ;;  %v2552_v43 = vpop.eup %2551 }
 0x323   :  { %v2114_v37 = vadd.f32 %v2548_v36, %v2113_v32  ;;  %v2040_v46 = vmul.f32 %v2552_v43, %v2038_v12 }
 0x325   :  { %2115 = vadd.xlane.f32.xlu1 %v2114_v37 }
 0x3aa   :  { %v2107_v45 = vpop.xlane.xlu0 %2106 }
 0x3ab   :  { %v2117_v15 = vadd.f32 %v2107_v45, %v2039_v30 }
 0x3ad   :  { %2120 = vst.msk [vmem:[#allocation3] sm:$0xff] %vm58_vm0, %v2117_v15 }
 0x3ae   :  { %v2116_v47 = vpop.xlane.xlu1 %2115 }
 0x3af   :  { %v2118_v48 = vadd.f32 %v2116_v47, %v2040_v46 }
 0x3b1   :  { %2121 = vst.msk [vmem:[#allocation3 + $0x8] sm:$0xff] %vm58_vm0, %v2118_v48 }
 0x3b4   :  { %v2150_v54 = vld [vmem:[#allocation3] sm:$0xff] }
 0x3b5   :  { %2553 = vlog2.f32 %v2150_v54 }
 0x3b8   :  { %v2151_v57 = vld [vmem:[#allocation3 + $0x8] sm:$0xff] }
 0x3b9   :  { %2555 = vlog2.f32 %v2151_v57 }
 0x3c2   :  { %v2554_v58 = vpop.eup %2553 }
 0x3c3   :  { %v2153_v60 = vmul.f32 0.6931472, %v2554_v58 }
 0x3c5   :  { %v2156_v63 = vadd.f32 %v2153_v60, %v2148_v62 }
 0x3c6   :  { %v2556_v49 = vpop.eup %2555 }
 0x3c7   :  { %2176 = vperm.xlu0 %2510, %v2156_v63   ;;  %v2155_v59 = vmul.f32 0.6931472, %v2556_v49 }
 0x3c9   :  { %v2157_v51 = vadd.f32 %v2155_v59, %v2149_v50 }
 0x3cb   :  { %2181 = vperm.xlu1 %2509, %v2157_v51  }
 0x442   :  { %v2177_v52 = vpop.permute.xlu0 %2176 }
 0x443   :  { %v2184_v53 = vsub.f32 %v2717_v7, %v2177_v52  ;;  %v2185_v55 = vsub.f32 %v2723_v18, %v2177_v52  ;;  %v2186_v61 = vsub.f32 %v2715_v3, %v2177_v52  ;;  %v2187_v0 = vsub.f32 %v2719_v8, %v2177_v52 }
 0x444   :  { %v2188_v1 = vsub.f32 %v2721_v14, %v2177_v52  ;;  %v2189_v2 = vsub.f32 %v2725_v19, %v2177_v52  ;;  %v2190_v4 = vsub.f32 %v2735_v31, %v2177_v52  ;;  %v2191_v5 = vsub.f32 %v2748_v39, %v2177_v52 }
 0x445   :  { %2200 = vst [vmem:[#allocation10] sm:$0xff] %v2184_v53  ;;  %2201 = vst [vmem:[#allocation10 + $0x8] sm:$0xff] %v2185_v55 }
 0x446   :  { %2202 = vst [vmem:[#allocation10 + $0x10] sm:$0xff] %v2186_v61  ;;  %2203 = vst [vmem:[#allocation10 + $0x18] sm:$0xff] %v2187_v0  ;;  %v2182_v3 = vpop.permute.xlu1 %2181 }
 0x447   :  { %2204 = vst [vmem:[#allocation10 + $0x20] sm:$0xff] %v2188_v1  ;;  %2205 = vst [vmem:[#allocation10 + $0x28] sm:$0xff] %v2189_v2  ;;  %v2192_v7 = vsub.f32 %v2738_v33, %v2182_v3  ;;  %v2193_v8 = vsub.f32 %v2741_v34, %v2182_v3  ;;  %v2194_v14 = vsub.f32 %v2729_v24, %v2182_v3 }
 0x448   :  { %2206 = vst [vmem:[#allocation10 + $0x30] sm:$0xff] %v2190_v4  ;;  %2207 = vst [vmem:[#allocation10 + $0x38] sm:$0xff] %v2191_v5  ;;  %v2195_v18 = vsub.f32 %v2731_v25, %v2182_v3  ;;  %v2196_v19 = vsub.f32 %v2743_v35, %v2182_v3  ;;  %v2197_v31 = vsub.f32 %v2746_v38, %v2182_v3 }
 0x449   :  { %v2198_v39 = vsub.f32 %v2755_v44, %v2182_v3  ;;  %v2199_v6 = vsub.f32 %v2761_v56, %v2182_v3  ;;  %2208 = vst [vmem:[#allocation10 + $0x40] sm:$0xff] %v2192_v7  ;;  %2209 = vst [vmem:[#allocation10 + $0x48] sm:$0xff] %v2193_v8 }
 0x44a   :  { %2210 = vst [vmem:[#allocation10 + $0x50] sm:$0xff] %v2194_v14  ;;  %2211 = vst [vmem:[#allocation10 + $0x58] sm:$0xff] %v2195_v18 }
 0x44b   :  { %2212 = vst [vmem:[#allocation10 + $0x60] sm:$0xff] %v2196_v19  ;;  %2213 = vst [vmem:[#allocation10 + $0x68] sm:$0xff] %v2197_v31 }
 0x44c   :  { %2214 = vst [vmem:[#allocation10 + $0x70] sm:$0xff] %v2198_v39  ;;  %2215 = vst [vmem:[#allocation10 + $0x78] sm:$0xff] %v2199_v6 }
 0x44d   :  { %2632 = shalt.err (!%p2629_p5)
}
 0x44e   :  { %s2658_s4 = smov 1024   ;;  %s2659_s5 = smov 64  }
 0x44f   :  { %2227 = dma.vmem_to_hbm [thread:$0]  %s2222_s2, 2048, %s2833_s3, [#allocation6], %s2658_s4, %s2658_s4, %s2659_s5  }
 0x450   :  { %2645 = dma.done.wait [#allocation6], 2048  }
 0x451   :  { %2646 = vsyncadd [#allocation6], 4294965248 }
 0x452   :  { %2231 = vsyncpa [#allocation5], 1 }
 0x453   :  { %2232 = vsyncpa [#allocation8], 1 }
 0x454   :  { %2233 = vsyncpa [#allocation6], 1 }

</bundles_post_ra>
